<compile_context>
chip_gen: v7x
topology: tpu7x:2x2x1
jax: 0.10.0
libtpu: 0.0.40
codegen_flags: <defaults>
</compile_context>

<pallas_src>
import functools

import numpy as np
import jax
import jax.numpy as jnp
from jax.experimental import pallas as pl
from jax.experimental.pallas import tpu as pltpu


# ----------------------------------------------------------------------------
# helpers
# ----------------------------------------------------------------------------
def _round_up(n, m):
    return ((n + m - 1) // m) * m


def _choose_time_tile(T, Bp, Ein_max, Hp, budget_bytes=12 * 1024 * 1024):
    """Largest power-of-two time tile whose VMEM working set fits the budget."""
    fixed = 4 * ((Ein_max + Hp + 1) * 4 * Hp + 4 * Bp * Hp)  # weights + h/c state
    best, t = 1, 1
    while t <= T:
        # double-buffered x tile + double-buffered out tile + gates scratch
        per_tile = 4 * (2 * t * Bp * Ein_max + 2 * t * Bp * Hp + t * Bp * 4 * Hp)
        if fixed + per_tile <= budget_bytes:
            best = t
        t *= 2
    return min(best, T)


def _choose_row_tile(Tp, Bp, cap_rows=512):
    k = max(1, min(Tp, cap_rows // Bp))
    while Tp % k:
        k -= 1
    return Bp * k


# ----------------------------------------------------------------------------
# Pallas kernel: one LSTM layer, time-tiled.  PyTorch gate order [i, f, g, o].
# ----------------------------------------------------------------------------
def lstm_layer_kernel(x_ref, h0_ref, c0_ref, wih_ref, whh_ref, b_ref,
                      out_ref, h_scr, c_scr, gx_scr):
    # x_ref:   [Tt*Bp, Ein]   (time-major, batch fastest)
    # h0/c0:   [Bp, Hp]
    # wih_ref: [Ein, 4Hp]  whh_ref: [Hp, 4Hp]  b_ref: [1, 4Hp]  (pre-transposed)
    # out_ref: [Tt*Bp, Hp]
    rows, _ = x_ref.shape
    Bp, Hp = h_scr.shape
    Tt = rows // Bp

    @pl.when(pl.program_id(0) == 0)
    def _init():
        h_scr[...] = h0_ref[...]
        c_scr[...] = c0_ref[...]

    # Hoisted input projection: one big MXU matmul for the whole time tile,
    # bias folded in here (not re-added every step).
    gx_scr[...] = (jnp.dot(x_ref[...], wih_ref[...],
                           preferred_element_type=jnp.float32) + b_ref[...])

    def step(t, carry):
        row0 = pl.multiple_of(t * Bp, Bp)
        h_prev = h_scr[...]
        c_prev = c_scr[...]
        gates = (gx_scr[pl.ds(row0, Bp), :]
                 + jnp.dot(h_prev, whh_ref[...],
                           preferred_element_type=jnp.float32))     # [Bp, 4Hp]
        i_g = jax.nn.sigmoid(gates[:, 0 * Hp:1 * Hp])
        f_g = jax.nn.sigmoid(gates[:, 1 * Hp:2 * Hp])
        g_g = jnp.tanh(gates[:, 2 * Hp:3 * Hp])
        o_g = jax.nn.sigmoid(gates[:, 3 * Hp:4 * Hp])
        c_new = f_g * c_prev + i_g * g_g
        h_new = o_g * jnp.tanh(c_new)
        c_scr[...] = c_new
        h_scr[...] = h_new
        out_ref[pl.ds(row0, Bp), :] = h_new
        return carry

    jax.lax.fori_loop(0, Tt, step, 0)


def lstm_layer(x2d, h0, c0, w_ih_t, w_hh_t, b, *, time_tile, batch_pad):
    rows_total, Ein = x2d.shape
    Bp = batch_pad
    Hp = w_hh_t.shape[0]
    tile_rows = time_tile * Bp
    grid = (rows_total // tile_rows,)
    return pl.pallas_call(
        lstm_layer_kernel,
        grid=grid,
        in_specs=[
            pl.BlockSpec((tile_rows, Ein), lambda t: (t, 0)),
            pl.BlockSpec((Bp, Hp), lambda t: (0, 0)),
            pl.BlockSpec((Bp, Hp), lambda t: (0, 0)),
            pl.BlockSpec((Ein, 4 * Hp), lambda t: (0, 0)),
            pl.BlockSpec((Hp, 4 * Hp), lambda t: (0, 0)),
            pl.BlockSpec((1, 4 * Hp), lambda t: (0, 0)),
        ],
        out_specs=pl.BlockSpec((tile_rows, Hp), lambda t: (t, 0)),
        out_shape=jax.ShapeDtypeStruct((rows_total, Hp), jnp.float32),
        scratch_shapes=[
            pltpu.VMEM((Bp, Hp), jnp.float32),            # h
            pltpu.VMEM((Bp, Hp), jnp.float32),            # c
            pltpu.VMEM((tile_rows, 4 * Hp), jnp.float32),  # hoisted input gates
        ],
        compiler_params=pltpu.CompilerParams(
            dimension_semantics=("arbitrary",),
            vmem_limit_bytes=32 * 1024 * 1024),
    )(x2d, h0, c0, w_ih_t, w_hh_t, b)


# ----------------------------------------------------------------------------
# Pallas kernel: hidden2tag projection (tiled matmul) + pack/pad zero masking
# ----------------------------------------------------------------------------
def hidden2tag_kernel(h_ref, w_ref, b_ref, m_ref, out_ref):
    # h_ref: [Rt, Hp], w_ref: [Hp, Dt], b_ref: [1, Dt], m_ref: [Rt, 1] f32
    logits = (jnp.dot(h_ref[...], w_ref[...],
                      preferred_element_type=jnp.float32) + b_ref[...])
    out_ref[...] = logits * m_ref[...]


def hidden2tag(h_rows, w_out_t, b_out, mask_rows, *, row_tile, col_tile):
    R, Hp = h_rows.shape
    Dp = w_out_t.shape[1]
    grid = (R // row_tile, Dp // col_tile)
    return pl.pallas_call(
        hidden2tag_kernel,
        grid=grid,
        in_specs=[
            pl.BlockSpec((row_tile, Hp), lambda r, d: (r, 0)),
            pl.BlockSpec((Hp, col_tile), lambda r, d: (0, d)),
            pl.BlockSpec((1, col_tile), lambda r, d: (0, d)),
            pl.BlockSpec((row_tile, 1), lambda r, d: (r, 0)),
        ],
        out_specs=pl.BlockSpec((row_tile, col_tile), lambda r, d: (r, d)),
        out_shape=jax.ShapeDtypeStruct((R, Dp), jnp.float32),
        compiler_params=pltpu.CompilerParams(
            dimension_semantics=("parallel", "parallel")),
    )(h_rows, w_out_t, b_out, mask_rows)


# ----------------------------------------------------------------------------
# Parameter init (PyTorch layout) + one-time packing (pad + pre-transpose)
# ----------------------------------------------------------------------------
def init_params(key, dictionary_size, embedding_dim, hidden_size, num_layers):
    n_keys = 2 + 4 * num_layers + 2
    keys = jax.random.split(key, n_keys)
    k = iter(keys)
    scale = 1.0 / np.sqrt(hidden_size)

    emb = jax.random.normal(next(k), (dictionary_size, embedding_dim), jnp.float32)
    emb = emb.at[0].set(0.0)  # padding_idx=0
    _ = next(k)  # reserved

    w_ih, w_hh, b_ih, b_hh = [], [], [], []
    for layer in range(num_layers):
        in_dim = embedding_dim if layer == 0 else hidden_size
        w_ih.append(jax.random.uniform(next(k), (4 * hidden_size, in_dim),
                                       jnp.float32, -scale, scale))
        w_hh.append(jax.random.uniform(next(k), (4 * hidden_size, hidden_size),
                                       jnp.float32, -scale, scale))
        b_ih.append(jax.random.uniform(next(k), (4 * hidden_size,),
                                       jnp.float32, -scale, scale))
        b_hh.append(jax.random.uniform(next(k), (4 * hidden_size,),
                                       jnp.float32, -scale, scale))

    w_out = jax.random.uniform(next(k), (dictionary_size, hidden_size),
                               jnp.float32, -scale, scale)
    b_out = jax.random.uniform(next(k), (dictionary_size,),
                               jnp.float32, -scale, scale)
    return dict(embedding=emb, w_ih=w_ih, w_hh=w_hh, b_ih=b_ih, b_hh=b_hh,
                w_out=w_out, b_out=b_out)


def pack_params(raw, lane=128):
    """Pad E/H/D to lane multiples (per gate) and pre-transpose all weights."""
    E = raw["embedding"].shape[1]
    H = raw["w_hh"][0].shape[1]
    D = raw["w_out"].shape[0]
    Ep, Hp, Dp = _round_up(E, lane), _round_up(H, lane), _round_up(D, lane)

    emb = jnp.pad(raw["embedding"], ((0, 0), (0, Ep - E)))

    w_ih_t, w_hh_t, bias = [], [], []
    for l in range(len(raw["w_ih"])):
        in_dim = raw["w_ih"][l].shape[1]
        in_p = Ep if l == 0 else Hp
        wih = raw["w_ih"][l].reshape(4, H, in_dim)
        wih = jnp.pad(wih, ((0, 0), (0, Hp - H), (0, in_p - in_dim)))
        w_ih_t.append(wih.reshape(4 * Hp, in_p).T)                    # [in_p, 4Hp]
        whh = raw["w_hh"][l].reshape(4, H, H)
        whh = jnp.pad(whh, ((0, 0), (0, Hp - H), (0, Hp - H)))
        w_hh_t.append(whh.reshape(4 * Hp, Hp).T)                      # [Hp, 4Hp]
        b = (raw["b_ih"][l] + raw["b_hh"][l]).reshape(4, H)
        b = jnp.pad(b, ((0, 0), (0, Hp - H)))
        bias.append(b.reshape(1, 4 * Hp))

    w_out_t = jnp.pad(raw["w_out"], ((0, Dp - D), (0, Hp - H))).T     # [Hp, Dp]
    b_out = jnp.pad(raw["b_out"], (0, Dp - D)).reshape(1, Dp)

    return dict(embedding=emb, w_ih_t=w_ih_t, w_hh_t=w_hh_t, bias=bias,
                w_out_t=w_out_t, b_out=b_out)


# ----------------------------------------------------------------------------
# Forward pass (glue in JAX, hot paths in Pallas).  Jittable: no host syncs.
# ----------------------------------------------------------------------------
def lstm_model_forward(cfg, params, inputs, token_lengths, hidden_key):
    # inputs: [B, L] int32 token ids; token_lengths: [B] int32
    H, D = cfg["hidden_size"], cfg["dict_size"]
    B, L = inputs.shape
    Ep = params["embedding"].shape[1]
    Hp = params["w_hh_t"][0].shape[0]
    Dp = params["w_out_t"].shape[1]
    num_layers = len(params["w_ih_t"])

    Bp = _round_up(B, 8)
    Tt = _choose_time_tile(L, Bp, max(Ep, Hp), Hp)
    Tp = _round_up(L, Tt)

    # Embedding lookup (gather stays in XLA): pad batch with id 0 (zero row),
    # pad time with id 0, and go time-major directly (no activation transpose).
    ids = jnp.pad(inputs.astype(jnp.int32), ((0, Bp - B), (0, Tp - L)))
    x = jnp.take(params["embedding"], ids.T, axis=0).astype(jnp.float32)  # [Tp,Bp,Ep]
    x = x.reshape(Tp * Bp, Ep)                                            # flat, free

    # self.hidden = init_hidden(...) -> randn, deterministic from key; padded
    # hidden/cell entries are zero so they stay exactly zero through the gates.
    kh, kc = jax.random.split(hidden_key)
    h0 = jnp.pad(jax.random.normal(kh, (num_layers, B, H), jnp.float32),
                 ((0, 0), (0, Bp - B), (0, Hp - H)))
    c0 = jnp.pad(jax.random.normal(kc, (num_layers, B, H), jnp.float32),
                 ((0, 0), (0, Bp - B), (0, Hp - H)))

    for layer in range(num_layers):
        x = lstm_layer(x, h0[layer], c0[layer],
                       params["w_ih_t"][layer], params["w_hh_t"][layer],
                       params["bias"][layer],
                       time_tile=Tt, batch_pad=Bp)        # [Tp*Bp, Hp]
        # TODO(synk): inter-layer dropout for p>0 not implemented (p=0 default).

    # pack/pad mask: zero out t >= token_lengths[b] (padded batch rows -> 0).
    lens = jnp.pad(token_lengths.astype(jnp.int32), (0, Bp - B))
    mask = jnp.arange(Tp, dtype=jnp.int32)[:, None] < lens[None, :]       # [Tp,Bp]
    mask_rows = mask.astype(jnp.float32).reshape(Tp * Bp, 1)

    row_tile = _choose_row_tile(Tp, Bp)
    col_tile = 256 if Dp % 256 == 0 else 128
    logits = hidden2tag(x, params["w_out_t"], params["b_out"], mask_rows,
                        row_tile=row_tile, col_tile=col_tile)             # [Tp*Bp,Dp]

    # Single batch-first relayout + crop of padding.  Full length L is kept
    # (positions past each length are exactly 0); cropping the time axis to
    # max(token_lengths) is left to the caller to keep the forward jittable.
    out = jnp.transpose(logits.reshape(Tp, Bp, Dp), (1, 0, 2))[:B, :L, :D]
    return out


if __name__ == "__main__":
    dictionary_size = 16
    embedding_dim = 32
    hidden_size = 32
    num_layers = 2
    batch_size = 2
    seq_len = 8

    key = jax.random.PRNGKey(0)
    k_param, k_input, k_hidden = jax.random.split(key, 3)

    raw_params = init_params(k_param, dictionary_size, embedding_dim,
                             hidden_size, num_layers)
    packed = pack_params(raw_params)

    inputs = jax.random.randint(k_input, (batch_size, seq_len), 0,
                                dictionary_size, dtype=jnp.int32)
    token_lengths = jnp.array([8, 5], dtype=jnp.int32)

    cfg = dict(hidden_size=hidden_size, dict_size=dictionary_size)
    forward = jax.jit(functools.partial(lstm_model_forward, cfg))

    out_full = forward(packed, inputs, token_lengths, k_hidden)
    out_full = jax.block_until_ready(out_full)

    # pad_packed_sequence crops the time axis to max(token_lengths) — cosmetic
    # crop done host-side, outside the jitted forward.
    lens_np = np.asarray(token_lengths)
    max_len = int(lens_np.max())
    out_np = np.asarray(out_full)[:, :max_len]

    # Sanity checks on pack/pad semantics and shapes.
    assert out_np.shape == (batch_size, max_len, dictionary_size), out_np.shape
    assert np.all(np.isfinite(out_np))
    # positions past each sequence length must be exactly zero
    assert np.all(out_np[1, int(lens_np[1]):, :] == 0.0)

    print("KERNEL_OK")
</pallas_src>

<mosaic_0001>
module attributes {stable_mosaic.version = 11 : i64} {
  func.func @lstm_layer_kernel(%arg0: i32, %arg1: memref<64x128xf32, #tpu.memory_space<vmem>>, %arg2: memref<8x128xf32, #tpu.memory_space<vmem>>, %arg3: memref<8x128xf32, #tpu.memory_space<vmem>>, %arg4: memref<128x512xf32, #tpu.memory_space<vmem>>, %arg5: memref<128x512xf32, #tpu.memory_space<vmem>>, %arg6: memref<1x512xf32, #tpu.memory_space<vmem>>, %arg7: memref<64x128xf32, #tpu.memory_space<vmem>>, %arg8: memref<8x128xf32, #tpu.memory_space<vmem>>, %arg9: memref<8x128xf32, #tpu.memory_space<vmem>>, %arg10: memref<64x512xf32, #tpu.memory_space<vmem>>) attributes {dimension_semantics = [#tpu.dimension_semantics<arbitrary>], iteration_bounds = array<i64: 1>, scalar_prefetch = 0 : i64, scratch_operands = 3 : i64, tpu.core_type = #tpu.core_type<tc>, window_params = [{transform_indices = @transform_0, window_bounds = array<i64: 64, 128>}, {pipeline_mode = #tpu.pipeline_mode<synchronous>, transform_indices = @transform_1, window_bounds = array<i64: 8, 128>}, {pipeline_mode = #tpu.pipeline_mode<synchronous>, transform_indices = @transform_2, window_bounds = array<i64: 8, 128>}, {pipeline_mode = #tpu.pipeline_mode<synchronous>, transform_indices = @transform_3, window_bounds = array<i64: 128, 512>}, {pipeline_mode = #tpu.pipeline_mode<synchronous>, transform_indices = @transform_4, window_bounds = array<i64: 128, 512>}, {pipeline_mode = #tpu.pipeline_mode<synchronous>, transform_indices = @transform_5, window_bounds = array<i64: 1, 512>}, {transform_indices = @transform_6, window_bounds = array<i64: 64, 128>}]} {
    %c0_i32 = arith.constant 0 : i32
    %0 = arith.cmpi eq, %arg0, %c0_i32 : i32
    %1 = arith.extui %0 : i1 to i32
    %c0_i32_0 = arith.constant 0 : i32
    %2 = arith.cmpi ne, %1, %c0_i32_0 : i32
    scf.if %2 {
      %c0_10 = arith.constant 0 : index
      %c0_11 = arith.constant 0 : index
      %11 = vector.load %arg2[%c0_10, %c0_11] : memref<8x128xf32, #tpu.memory_space<vmem>>, vector<8x128xf32>
      %c0_12 = arith.constant 0 : index
      %c0_13 = arith.constant 0 : index
      %12 = vector.load %arg8[%c0_12, %c0_13] : memref<8x128xf32, #tpu.memory_space<vmem>>, vector<8x128xf32>
      tpu.vector_store %arg8[%c0_12, %c0_13], %11 {strides = array<i32>} : memref<8x128xf32, #tpu.memory_space<vmem>>, vector<8x128xf32>,
      %c0_14 = arith.constant 0 : index
      %c0_15 = arith.constant 0 : index
      %13 = vector.load %arg3[%c0_14, %c0_15] : memref<8x128xf32, #tpu.memory_space<vmem>>, vector<8x128xf32>
      %c0_16 = arith.constant 0 : index
      %c0_17 = arith.constant 0 : index
      %14 = vector.load %arg9[%c0_16, %c0_17] : memref<8x128xf32, #tpu.memory_space<vmem>>, vector<8x128xf32>
      tpu.vector_store %arg9[%c0_16, %c0_17], %13 {strides = array<i32>} : memref<8x128xf32, #tpu.memory_space<vmem>>, vector<8x128xf32>,
    } else {
    }
    %c0 = arith.constant 0 : index
    %c0_1 = arith.constant 0 : index
    %3 = vector.load %arg1[%c0, %c0_1] : memref<64x128xf32, #tpu.memory_space<vmem>>, vector<64x128xf32>
    %c0_2 = arith.constant 0 : index
    %c0_3 = arith.constant 0 : index
    %4 = vector.load %arg4[%c0_2, %c0_3] : memref<128x512xf32, #tpu.memory_space<vmem>>, vector<128x512xf32>
    %cst = arith.constant dense<0.000000e+00> : vector<64x512xf32>
    %5 = tpu.matmul %3, %4, %cst {dimension_numbers = #tpu.dot_dimension_numbers<[1], [0], [0], [1], [0, 0, 1, 1], [], []>} : vector<64x128xf32>, vector<128x512xf32>, vector<64x512xf32> -> vector<64x512xf32>
    %c0_4 = arith.constant 0 : index
    %c0_5 = arith.constant 0 : index
    %6 = vector.load %arg6[%c0_4, %c0_5] : memref<1x512xf32, #tpu.memory_space<vmem>>, vector<1x512xf32>
    %7 = vector.broadcast %6 : vector<1x512xf32> to vector<64x512xf32>
    %8 = arith.addf %5, %7 : vector<64x512xf32>
    %c0_6 = arith.constant 0 : index
    %c0_7 = arith.constant 0 : index
    %9 = vector.load %arg10[%c0_6, %c0_7] : memref<64x512xf32, #tpu.memory_space<vmem>>, vector<64x512xf32>
    tpu.vector_store %arg10[%c0_6, %c0_7], %8 {strides = array<i32>} : memref<64x512xf32, #tpu.memory_space<vmem>>, vector<64x512xf32>,
    %c0_i32_8 = arith.constant 0 : i32
    %c8_i32 = arith.constant 8 : i32
    %10 = arith.addi %c0_i32_8, %c8_i32 : i32
    %c1_i32 = arith.constant 1 : i32
    scf.for %arg11 = %c0_i32_8 to %10 step %c1_i32  : i32 {
      %c8_i32_10 = arith.constant 8 : i32
      %11 = arith.muli %arg11, %c8_i32_10 : i32
      %12 = tpu.assume_multiple %11, 8 : i32
      %c0_11 = arith.constant 0 : index
      %c0_12 = arith.constant 0 : index
      %13 = vector.load %arg8[%c0_11, %c0_12] : memref<8x128xf32, #tpu.memory_space<vmem>>, vector<8x128xf32>
      %c0_13 = arith.constant 0 : index
      %c0_14 = arith.constant 0 : index
      %14 = vector.load %arg9[%c0_13, %c0_14] : memref<8x128xf32, #tpu.memory_space<vmem>>, vector<8x128xf32>
      %15 = arith.index_cast %12 : i32 to index
      %c0_15 = arith.constant 0 : index
      %16 = vector.load %arg10[%15, %c0_15] : memref<64x512xf32, #tpu.memory_space<vmem>>, vector<8x512xf32>
      %c0_16 = arith.constant 0 : index
      %c0_17 = arith.constant 0 : index
      %17 = vector.load %arg5[%c0_16, %c0_17] : memref<128x512xf32, #tpu.memory_space<vmem>>, vector<128x512xf32>
      %cst_18 = arith.constant dense<0.000000e+00> : vector<8x512xf32>
      %18 = tpu.matmul %13, %17, %cst_18 {dimension_numbers = #tpu.dot_dimension_numbers<[1], [0], [0], [1], [0, 0, 1, 1], [], []>} : vector<8x128xf32>, vector<128x512xf32>, vector<8x512xf32> -> vector<8x512xf32>
      %19 = arith.addf %16, %18 : vector<8x512xf32>
      %20 = vector.extract_strided_slice %19 {offsets = [0, 0], sizes = [8, 128], strides = [1, 1]} : vector<8x512xf32> to vector<8x128xf32>
      %21 = arith.negf %20 : vector<8x128xf32>
      %22 = math.exp %21 : vector<8x128xf32>
      %cst_19 = arith.constant 1.000000e+00 : f32
      %23 = vector.broadcast %cst_19 : f32 to vector<8x128xf32>
      %24 = arith.addf %23, %22 : vector<8x128xf32>
      %25 = arith.divf %23, %24 : vector<8x128xf32>
      %26 = vector.extract_strided_slice %19 {offsets = [0, 128], sizes = [8, 128], strides = [1, 1]} : vector<8x512xf32> to vector<8x128xf32>
      %27 = arith.negf %26 : vector<8x128xf32>
      %28 = math.exp %27 : vector<8x128xf32>
      %cst_20 = arith.constant 1.000000e+00 : f32
      %29 = vector.broadcast %cst_20 : f32 to vector<8x128xf32>
      %30 = arith.addf %29, %28 : vector<8x128xf32>
      %31 = arith.divf %29, %30 : vector<8x128xf32>
      %32 = vector.extract_strided_slice %19 {offsets = [0, 256], sizes = [8, 128], strides = [1, 1]} : vector<8x512xf32> to vector<8x128xf32>
      %33 = math.tanh %32 : vector<8x128xf32>
      %34 = vector.extract_strided_slice %19 {offsets = [0, 384], sizes = [8, 128], strides = [1, 1]} : vector<8x512xf32> to vector<8x128xf32>
      %35 = arith.negf %34 : vector<8x128xf32>
      %36 = math.exp %35 : vector<8x128xf32>
      %cst_21 = arith.constant 1.000000e+00 : f32
      %37 = vector.broadcast %cst_21 : f32 to vector<8x128xf32>
      %38 = arith.addf %37, %36 : vector<8x128xf32>
      %39 = arith.divf %37, %38 : vector<8x128xf32>
      %40 = arith.mulf %31, %14 : vector<8x128xf32>
      %41 = arith.mulf %25, %33 : vector<8x128xf32>
      %42 = arith.addf %40, %41 : vector<8x128xf32>
      %43 = math.tanh %42 : vector<8x128xf32>
      %44 = arith.mulf %39, %43 : vector<8x128xf32>
      %c0_22 = arith.constant 0 : index
      %c0_23 = arith.constant 0 : index
      %45 = vector.load %arg9[%c0_22, %c0_23] : memref<8x128xf32, #tpu.memory_space<vmem>>, vector<8x128xf32>
      tpu.vector_store %arg9[%c0_22, %c0_23], %42 {strides = array<i32>} : memref<8x128xf32, #tpu.memory_space<vmem>>, vector<8x128xf32>,
      %c0_24 = arith.constant 0 : index
      %c0_25 = arith.constant 0 : index
      %46 = vector.load %arg8[%c0_24, %c0_25] : memref<8x128xf32, #tpu.memory_space<vmem>>, vector<8x128xf32>
      tpu.vector_store %arg8[%c0_24, %c0_25], %44 {strides = array<i32>} : memref<8x128xf32, #tpu.memory_space<vmem>>, vector<8x128xf32>,
      %47 = arith.index_cast %12 : i32 to index
      %c0_26 = arith.constant 0 : index
      %48 = vector.load %arg7[%47, %c0_26] : memref<64x128xf32, #tpu.memory_space<vmem>>, vector<8x128xf32>
      tpu.vector_store %arg7[%47, %c0_26], %44 {strides = array<i32>} : memref<64x128xf32, #tpu.memory_space<vmem>>, vector<8x128xf32>,
    }
    %c8_i32_9 = arith.constant 8 : i32
    return
  }
  func.func @transform_0(%arg0: i32) -> (i32, i32) {
    %c0_i32 = arith.constant 0 : i32
    %c0_i32_0 = arith.constant 0 : i32
    return %arg0, %c0_i32 : i32, i32
  }
  func.func @transform_1(%arg0: i32) -> (i32, i32) {
    %c0_i32 = arith.constant 0 : i32
    %c0_i32_0 = arith.constant 0 : i32
    %c0_i32_1 = arith.constant 0 : i32
    return %c0_i32, %c0_i32_0 : i32, i32
  }
  func.func @transform_2(%arg0: i32) -> (i32, i32) {
    %c0_i32 = arith.constant 0 : i32
    %c0_i32_0 = arith.constant 0 : i32
    %c0_i32_1 = arith.constant 0 : i32
    return %c0_i32, %c0_i32_0 : i32, i32
  }
  func.func @transform_3(%arg0: i32) -> (i32, i32) {
    %c0_i32 = arith.constant 0 : i32
    %c0_i32_0 = arith.constant 0 : i32
    %c0_i32_1 = arith.constant 0 : i32
    return %c0_i32, %c0_i32_0 : i32, i32
  }
  func.func @transform_4(%arg0: i32) -> (i32, i32) {
    %c0_i32 = arith.constant 0 : i32
    %c0_i32_0 = arith.constant 0 : i32
    %c0_i32_1 = arith.constant 0 : i32
    return %c0_i32, %c0_i32_0 : i32, i32
  }
  func.func @transform_5(%arg0: i32) -> (i32, i32) {
    %c0_i32 = arith.constant 0 : i32
    %c0_i32_0 = arith.constant 0 : i32
    %c0_i32_1 = arith.constant 0 : i32
    return %c0_i32, %c0_i32_0 : i32, i32
  }
  func.func @transform_6(%arg0: i32) -> (i32, i32) {
    %c0_i32 = arith.constant 0 : i32
    %c0_i32_0 = arith.constant 0 : i32
    return %arg0, %c0_i32 : i32, i32
  }
}

module attributes {stable_mosaic.version = 11 : i64} {
  func.func @hidden2tag_kernel(%arg0: i32, %arg1: i32, %arg2: memref<64x128xf32, #tpu.memory_space<vmem>>, %arg3: memref<128x128xf32, #tpu.memory_space<vmem>>, %arg4: memref<1x128xf32, #tpu.memory_space<vmem>>, %arg5: memref<64x1xf32, #tpu.memory_space<vmem>>, %arg6: memref<64x128xf32, #tpu.memory_space<vmem>>) attributes {dimension_semantics = [#tpu.dimension_semantics<parallel>, #tpu.dimension_semantics<parallel>], iteration_bounds = array<i64: 1, 1>, scalar_prefetch = 0 : i64, scratch_operands = 0 : i64, tpu.core_type = #tpu.core_type<tc>, window_params = [{transform_indices = @transform_0, window_bounds = array<i64: 64, 128>}, {transform_indices = @transform_1, window_bounds = array<i64: 128, 128>}, {transform_indices = @transform_2, window_bounds = array<i64: 1, 128>}, {transform_indices = @transform_3, window_bounds = array<i64: 64, 1>}, {transform_indices = @transform_4, window_bounds = array<i64: 64, 128>}]} {
    %c0 = arith.constant 0 : index
    %c0_0 = arith.constant 0 : index
    %0 = vector.load %arg2[%c0, %c0_0] : memref<64x128xf32, #tpu.memory_space<vmem>>, vector<64x128xf32>
    %c0_1 = arith.constant 0 : index
    %c0_2 = arith.constant 0 : index
    %1 = vector.load %arg3[%c0_1, %c0_2] : memref<128x128xf32, #tpu.memory_space<vmem>>, vector<128x128xf32>
    %cst = arith.constant dense<0.000000e+00> : vector<64x128xf32>
    %2 = tpu.matmul %0, %1, %cst {dimension_numbers = #tpu.dot_dimension_numbers<[1], [0], [0], [1], [0, 0, 1, 1], [], []>} : vector<64x128xf32>, vector<128x128xf32>, vector<64x128xf32> -> vector<64x128xf32>
    %c0_3 = arith.constant 0 : index
    %c0_4 = arith.constant 0 : index
    %3 = vector.load %arg4[%c0_3, %c0_4] : memref<1x128xf32, #tpu.memory_space<vmem>>, vector<1x128xf32>
    %4 = vector.broadcast %3 : vector<1x128xf32> to vector<64x128xf32>
    %5 = arith.addf %2, %4 : vector<64x128xf32>
    %c0_5 = arith.constant 0 : index
    %c0_6 = arith.constant 0 : index
    %6 = vector.load %arg5[%c0_5, %c0_6] : memref<64x1xf32, #tpu.memory_space<vmem>>, vector<64x1xf32>
    %7 = vector.broadcast %6 : vector<64x1xf32> to vector<64x128xf32>
    %8 = arith.mulf %5, %7 : vector<64x128xf32>
    %c0_7 = arith.constant 0 : index
    %c0_8 = arith.constant 0 : index
    %9 = vector.load %arg6[%c0_7, %c0_8] : memref<64x128xf32, #tpu.memory_space<vmem>>, vector<64x128xf32>
    tpu.vector_store %arg6[%c0_7, %c0_8], %8 {strides = array<i32>} : memref<64x128xf32, #tpu.memory_space<vmem>>, vector<64x128xf32>,
    return
  }
  func.func @transform_0(%arg0: i32, %arg1: i32) -> (i32, i32) {
    %c0_i32 = arith.constant 0 : i32
    %c0_i32_0 = arith.constant 0 : i32
    return %arg0, %c0_i32 : i32, i32
  }
  func.func @transform_1(%arg0: i32, %arg1: i32) -> (i32, i32) {
    %c0_i32 = arith.constant 0 : i32
    %c0_i32_0 = arith.constant 0 : i32
    return %c0_i32, %arg1 : i32, i32
  }
  func.func @transform_2(%arg0: i32, %arg1: i32) -> (i32, i32) {
    %c0_i32 = arith.constant 0 : i32
    %c0_i32_0 = arith.constant 0 : i32
    return %c0_i32, %arg1 : i32, i32
  }
  func.func @transform_3(%arg0: i32, %arg1: i32) -> (i32, i32) {
    %c0_i32 = arith.constant 0 : i32
    %c0_i32_0 = arith.constant 0 : i32
    return %arg0, %c0_i32 : i32, i32
  }
  func.func @transform_4(%arg0: i32, %arg1: i32) -> (i32, i32) {
    %c0_i32 = arith.constant 0 : i32
    return %arg0, %arg1 : i32, i32
  }
}

module attributes {stable_mosaic.version = 11 : i64} {
  func.func @lstm_layer_kernel(%arg0: i32, %arg1: memref<64x128xf32, #tpu.memory_space<vmem>>, %arg2: memref<8x128xf32, #tpu.memory_space<vmem>>, %arg3: memref<8x128xf32, #tpu.memory_space<vmem>>, %arg4: memref<128x512xf32, #tpu.memory_space<vmem>>, %arg5: memref<128x512xf32, #tpu.memory_space<vmem>>, %arg6: memref<1x512xf32, #tpu.memory_space<vmem>>, %arg7: memref<64x128xf32, #tpu.memory_space<vmem>>, %arg8: memref<8x128xf32, #tpu.memory_space<vmem>>, %arg9: memref<8x128xf32, #tpu.memory_space<vmem>>, %arg10: memref<64x512xf32, #tpu.memory_space<vmem>>) attributes {dimension_semantics = [#tpu.dimension_semantics<arbitrary>], iteration_bounds = array<i64: 1>, scalar_prefetch = 0 : i64, scratch_operands = 3 : i64, tpu.core_type = #tpu.core_type<tc>, window_params = [{transform_indices = @transform_0, window_bounds = array<i64: 64, 128>}, {pipeline_mode = #tpu.pipeline_mode<synchronous>, transform_indices = @transform_1, window_bounds = array<i64: 8, 128>}, {pipeline_mode = #tpu.pipeline_mode<synchronous>, transform_indices = @transform_2, window_bounds = array<i64: 8, 128>}, {pipeline_mode = #tpu.pipeline_mode<synchronous>, transform_indices = @transform_3, window_bounds = array<i64: 128, 512>}, {pipeline_mode = #tpu.pipeline_mode<synchronous>, transform_indices = @transform_4, window_bounds = array<i64: 128, 512>}, {pipeline_mode = #tpu.pipeline_mode<synchronous>, transform_indices = @transform_5, window_bounds = array<i64: 1, 512>}, {transform_indices = @transform_6, window_bounds = array<i64: 64, 128>}]} {
    %c0_i32 = arith.constant 0 : i32
    %0 = arith.cmpi eq, %arg0, %c0_i32 : i32
    %1 = arith.extui %0 : i1 to i32
    %c0_i32_0 = arith.constant 0 : i32
    %2 = arith.cmpi ne, %1, %c0_i32_0 : i32
    scf.if %2 {
      %c0_10 = arith.constant 0 : index
      %c0_11 = arith.constant 0 : index
      %11 = vector.load %arg2[%c0_10, %c0_11] : memref<8x128xf32, #tpu.memory_space<vmem>>, vector<8x128xf32>
      %c0_12 = arith.constant 0 : index
      %c0_13 = arith.constant 0 : index
      %12 = vector.load %arg8[%c0_12, %c0_13] : memref<8x128xf32, #tpu.memory_space<vmem>>, vector<8x128xf32>
      tpu.vector_store %arg8[%c0_12, %c0_13], %11 {strides = array<i32>} : memref<8x128xf32, #tpu.memory_space<vmem>>, vector<8x128xf32>,
      %c0_14 = arith.constant 0 : index
      %c0_15 = arith.constant 0 : index
      %13 = vector.load %arg3[%c0_14, %c0_15] : memref<8x128xf32, #tpu.memory_space<vmem>>, vector<8x128xf32>
      %c0_16 = arith.constant 0 : index
      %c0_17 = arith.constant 0 : index
      %14 = vector.load %arg9[%c0_16, %c0_17] : memref<8x128xf32, #tpu.memory_space<vmem>>, vector<8x128xf32>
      tpu.vector_store %arg9[%c0_16, %c0_17], %13 {strides = array<i32>} : memref<8x128xf32, #tpu.memory_space<vmem>>, vector<8x128xf32>,
    } else {
    }
    %c0 = arith.constant 0 : index
    %c0_1 = arith.constant 0 : index
    %3 = vector.load %arg1[%c0, %c0_1] : memref<64x128xf32, #tpu.memory_space<vmem>>, vector<64x128xf32>
    %c0_2 = arith.constant 0 : index
    %c0_3 = arith.constant 0 : index
    %4 = vector.load %arg4[%c0_2, %c0_3] : memref<128x512xf32, #tpu.memory_space<vmem>>, vector<128x512xf32>
    %cst = arith.constant dense<0.000000e+00> : vector<64x512xf32>
    %5 = tpu.matmul %3, %4, %cst {dimension_numbers = #tpu.dot_dimension_numbers<[1], [0], [0], [1], [0, 0, 1, 1], [], []>} : vector<64x128xf32>, vector<128x512xf32>, vector<64x512xf32> -> vector<64x512xf32>
    %c0_4 = arith.constant 0 : index
    %c0_5 = arith.constant 0 : index
    %6 = vector.load %arg6[%c0_4, %c0_5] : memref<1x512xf32, #tpu.memory_space<vmem>>, vector<1x512xf32>
    %7 = vector.broadcast %6 : vector<1x512xf32> to vector<64x512xf32>
    %8 = arith.addf %5, %7 : vector<64x512xf32>
    %c0_6 = arith.constant 0 : index
    %c0_7 = arith.constant 0 : index
    %9 = vector.load %arg10[%c0_6, %c0_7] : memref<64x512xf32, #tpu.memory_space<vmem>>, vector<64x512xf32>
    tpu.vector_store %arg10[%c0_6, %c0_7], %8 {strides = array<i32>} : memref<64x512xf32, #tpu.memory_space<vmem>>, vector<64x512xf32>,
    %c0_i32_8 = arith.constant 0 : i32
    %c8_i32 = arith.constant 8 : i32
    %10 = arith.addi %c0_i32_8, %c8_i32 : i32
    %c1_i32 = arith.constant 1 : i32
    scf.for %arg11 = %c0_i32_8 to %10 step %c1_i32  : i32 {
      %c8_i32_10 = arith.constant 8 : i32
      %11 = arith.muli %arg11, %c8_i32_10 : i32
      %12 = tpu.assume_multiple %11, 8 : i32
      %c0_11 = arith.constant 0 : index
      %c0_12 = arith.constant 0 : index
      %13 = vector.load %arg8[%c0_11, %c0_12] : memref<8x128xf32, #tpu.memory_space<vmem>>, vector<8x128xf32>
      %c0_13 = arith.constant 0 : index
      %c0_14 = arith.constant 0 : index
      %14 = vector.load %arg9[%c0_13, %c0_14] : memref<8x128xf32, #tpu.memory_space<vmem>>, vector<8x128xf32>
      %15 = arith.index_cast %12 : i32 to index
      %c0_15 = arith.constant 0 : index
      %16 = vector.load %arg10[%15, %c0_15] : memref<64x512xf32, #tpu.memory_space<vmem>>, vector<8x512xf32>
      %c0_16 = arith.constant 0 : index
      %c0_17 = arith.constant 0 : index
      %17 = vector.load %arg5[%c0_16, %c0_17] : memref<128x512xf32, #tpu.memory_space<vmem>>, vector<128x512xf32>
      %cst_18 = arith.constant dense<0.000000e+00> : vector<8x512xf32>
      %18 = tpu.matmul %13, %17, %cst_18 {dimension_numbers = #tpu.dot_dimension_numbers<[1], [0], [0], [1], [0, 0, 1, 1], [], []>} : vector<8x128xf32>, vector<128x512xf32>, vector<8x512xf32> -> vector<8x512xf32>
      %19 = arith.addf %16, %18 : vector<8x512xf32>
      %20 = vector.extract_strided_slice %19 {offsets = [0, 0], sizes = [8, 128], strides = [1, 1]} : vector<8x512xf32> to vector<8x128xf32>
      %21 = arith.negf %20 : vector<8x128xf32>
      %22 = math.exp %21 : vector<8x128xf32>
      %cst_19 = arith.constant 1.000000e+00 : f32
      %23 = vector.broadcast %cst_19 : f32 to vector<8x128xf32>
      %24 = arith.addf %23, %22 : vector<8x128xf32>
      %25 = arith.divf %23, %24 : vector<8x128xf32>
      %26 = vector.extract_strided_slice %19 {offsets = [0, 128], sizes = [8, 128], strides = [1, 1]} : vector<8x512xf32> to vector<8x128xf32>
      %27 = arith.negf %26 : vector<8x128xf32>
      %28 = math.exp %27 : vector<8x128xf32>
      %cst_20 = arith.constant 1.000000e+00 : f32
      %29 = vector.broadcast %cst_20 : f32 to vector<8x128xf32>
      %30 = arith.addf %29, %28 : vector<8x128xf32>
      %31 = arith.divf %29, %30 : vector<8x128xf32>
      %32 = vector.extract_strided_slice %19 {offsets = [0, 256], sizes = [8, 128], strides = [1, 1]} : vector<8x512xf32> to vector<8x128xf32>
      %33 = math.tanh %32 : vector<8x128xf32>
      %34 = vector.extract_strided_slice %19 {offsets = [0, 384], sizes = [8, 128], strides = [1, 1]} : vector<8x512xf32> to vector<8x128xf32>
      %35 = arith.negf %34 : vector<8x128xf32>
      %36 = math.exp %35 : vector<8x128xf32>
      %cst_21 = arith.constant 1.000000e+00 : f32
      %37 = vector.broadcast %cst_21 : f32 to vector<8x128xf32>
      %38 = arith.addf %37, %36 : vector<8x128xf32>
      %39 = arith.divf %37, %38 : vector<8x128xf32>
      %40 = arith.mulf %31, %14 : vector<8x128xf32>
      %41 = arith.mulf %25, %33 : vector<8x128xf32>
      %42 = arith.addf %40, %41 : vector<8x128xf32>
      %43 = math.tanh %42 : vector<8x128xf32>
      %44 = arith.mulf %39, %43 : vector<8x128xf32>
      %c0_22 = arith.constant 0 : index
      %c0_23 = arith.constant 0 : index
      %45 = vector.load %arg9[%c0_22, %c0_23] : memref<8x128xf32, #tpu.memory_space<vmem>>, vector<8x128xf32>
      tpu.vector_store %arg9[%c0_22, %c0_23], %42 {strides = array<i32>} : memref<8x128xf32, #tpu.memory_space<vmem>>, vector<8x128xf32>,
      %c0_24 = arith.constant 0 : index
      %c0_25 = arith.constant 0 : index
      %46 = vector.load %arg8[%c0_24, %c0_25] : memref<8x128xf32, #tpu.memory_space<vmem>>, vector<8x128xf32>
      tpu.vector_store %arg8[%c0_24, %c0_25], %44 {strides = array<i32>} : memref<8x128xf32, #tpu.memory_space<vmem>>, vector<8x128xf32>,
      %47 = arith.index_cast %12 : i32 to index
      %c0_26 = arith.constant 0 : index
      %48 = vector.load %arg7[%47, %c0_26] : memref<64x128xf32, #tpu.memory_space<vmem>>, vector<8x128xf32>
      tpu.vector_store %arg7[%47, %c0_26], %44 {strides = array<i32>} : memref<64x128xf32, #tpu.memory_space<vmem>>, vector<8x128xf32>,
    }
    %c8_i32_9 = arith.constant 8 : i32
    return
  }
  func.func @transform_0(%arg0: i32) -> (i32, i32) {
    %c0_i32 = arith.constant 0 : i32
    %c0_i32_0 = arith.constant 0 : i32
    return %arg0, %c0_i32 : i32, i32
  }
  func.func @transform_1(%arg0: i32) -> (i32, i32) {
    %c0_i32 = arith.constant 0 : i32
    %c0_i32_0 = arith.constant 0 : i32
    %c0_i32_1 = arith.constant 0 : i32
    return %c0_i32, %c0_i32_0 : i32, i32
  }
  func.func @transform_2(%arg0: i32) -> (i32, i32) {
    %c0_i32 = arith.constant 0 : i32
    %c0_i32_0 = arith.constant 0 : i32
    %c0_i32_1 = arith.constant 0 : i32
    return %c0_i32, %c0_i32_0 : i32, i32
  }
  func.func @transform_3(%arg0: i32) -> (i32, i32) {
    %c0_i32 = arith.constant 0 : i32
    %c0_i32_0 = arith.constant 0 : i32
    %c0_i32_1 = arith.constant 0 : i32
    return %c0_i32, %c0_i32_0 : i32, i32
  }
  func.func @transform_4(%arg0: i32) -> (i32, i32) {
    %c0_i32 = arith.constant 0 : i32
    %c0_i32_0 = arith.constant 0 : i32
    %c0_i32_1 = arith.constant 0 : i32
    return %c0_i32, %c0_i32_0 : i32, i32
  }
  func.func @transform_5(%arg0: i32) -> (i32, i32) {
    %c0_i32 = arith.constant 0 : i32
    %c0_i32_0 = arith.constant 0 : i32
    %c0_i32_1 = arith.constant 0 : i32
    return %c0_i32, %c0_i32_0 : i32, i32
  }
  func.func @transform_6(%arg0: i32) -> (i32, i32) {
    %c0_i32 = arith.constant 0 : i32
    %c0_i32_0 = arith.constant 0 : i32
    return %arg0, %c0_i32 : i32, i32
  }
}

</mosaic_0001>

<bundles_post_ra>
// kernel: lstm_model_forward.5
= control target key start
LH: loop header
LB: loop body
LE: loop exit
PB: predicated region body
PF: predicated region fallthrough
CT: control target
= control target key end

     0   :  { %v341_v3 = vmov 0   ;;  %s490_s1 = inlined_call_operand.vmem [shape: f32[128,128], index: 1, kind: input, shape index: {}]   ;;  %s491_s0 = inlined_call_operand.vmem [shape: f32[64,128], index: 0, kind: input, shape index: {}]   ;;  %s492_s3 = inlined_call_operand.vmem [shape: f32[64,1], index: 3, kind: input, shape index: {}]   ;;  %s493_s2 = inlined_call_operand.vmem [shape: f32[1,128], index: 2, kind: input, shape index: {}]   ;;  %s494_s4 = inlined_call_operand.vmem [shape: f32[64,128], index: 4, kind: output, shape index: {}]  }
   0x1   :  { %v25_v0 = vld [vmem:[%s490_s1] sm:$0xff]  ;;  %v26_v1 = vld [vmem:[%s490_s1 + $0x8] sm:$0xff]  ;;  %v27_v2 = vld [vmem:[%s490_s1 + $0x10] sm:$0xff]  ;;  %340 = vset.pattern.permute.xlu1 %v341_v3  ;;  %339 = vset.pattern.permute.xlu0 %v341_v3 }
   0x2   :  { %v290_v4 = vpack.c.bf16 %v26_v1, %v25_v0  ;;  %v28_v5 = vld [vmem:[%s490_s1 + $0x18] sm:$0xff]  ;;  %v29_v7 = vld [vmem:[%s490_s1 + $0x20] sm:$0xff]  ;;  %v30_v8 = vld [vmem:[%s490_s1 + $0x28] sm:$0xff] }
   0x3   :  { %v294_v6 = vpack.c.bf16 %v28_v5, %v27_v2  ;;  %v298_v9 = vpack.c.bf16 %v30_v8, %v29_v7  ;;  %v17_v10 = vld [vmem:[%s491_s0] sm:$0xff]  ;;  %v31_v12 = vld [vmem:[%s490_s1 + $0x30] sm:$0xff]  ;;  %v32_v13 = vld [vmem:[%s490_s1 + $0x38] sm:$0xff] }
   0x4   :  { %291 = vmatprep.subr.bf16.mxu0 %v290_v4  ;;  %322 = vmatprep.subr.bf16.mxu1 %v290_v4  ;;  %v21_v11 = vld [vmem:[%s491_s0 + $0x20] sm:$0xff]  ;;  %v155_v14 = vld [vmem:[%s492_s3 + $0x10] sm:$0xff]  ;;  %v302_v16 = vpack.c.bf16 %v32_v13, %v31_v12  ;;  %v34_v18 = vld [vmem:[%s490_s1 + $0x48] sm:$0xff] }
   0x5   :  { %293 = vmatpush3.bf16.msra.mxu0 %v290_v4  ;;  %330 = vmatpush3.bf16.msra.mxu1 %v290_v4  ;;  %v153_v15 = vld [vmem:[%s492_s3] sm:$0xff]  ;;  %v156_v19 = vld [vmem:[%s492_s3 + $0x18] sm:$0xff]  ;;  %v154_v20 = vld [vmem:[%s492_s3 + $0x8] sm:$0xff] }
   0x6   :  { %295 = vmatprep.subr.bf16.mxu0 %v294_v6  ;;  %323 = vmatprep.subr.bf16.mxu1 %v294_v6  ;;  %v33_v17 = vld [vmem:[%s490_s1 + $0x40] sm:$0xff]  ;;  %v35_v22 = vld [vmem:[%s490_s1 + $0x50] sm:$0xff]  ;;  %v36_v23 = vld [vmem:[%s490_s1 + $0x58] sm:$0xff] }
   0x7   :  { %278 = vmatprep.mubr.f32.mxu0 %v17_v10  ;;  %284 = vmatprep.mubr.f32.mxu1 %v21_v11  ;;  %v306_v21 = vpack.c.bf16 %v34_v18, %v33_v17  ;;  %v158_v24 = vld [vmem:[%s492_s3 + $0x28] sm:$0xff]  ;;  %v157_v25 = vld [vmem:[%s492_s3 + $0x20] sm:$0xff]  ;;  %v310_v26 = vpack.c.bf16 %v36_v23, %v35_v22  ;;  %v160_v29 = vld [vmem:[%s492_s3 + $0x38] sm:$0xff] }
   0x8   :  { %173 = vperm.xlu1 %340, %v155_v14   ;;  %163 = vperm.xlu0 %339, %v153_v15   ;;  %v37_v27 = vld [vmem:[%s490_s1 + $0x60] sm:$0xff]  ;;  %v38_v28 = vld [vmem:[%s490_s1 + $0x68] sm:$0xff]  ;;  %v159_v30 = vld [vmem:[%s492_s3 + $0x30] sm:$0xff] }
   0x9   :  { %297 = vmatpush3.bf16.msra.mxu0 %v294_v6  ;;  %331 = vmatpush3.bf16.msra.mxu1 %v294_v6  ;;  %v314_v31 = vpack.c.bf16 %v38_v28, %v37_v27  ;;  %v39_v32 = vld [vmem:[%s490_s1 + $0x70] sm:$0xff]  ;;  %v40_v33 = vld [vmem:[%s490_s1 + $0x78] sm:$0xff]  ;;  %v18_v35 = vld [vmem:[%s491_s0 + $0x8] sm:$0xff] }
   0xa   :  { %299 = vmatprep.subr.bf16.mxu0 %v298_v9  ;;  %324 = vmatprep.subr.bf16.mxu1 %v298_v9  ;;  %v318_v34 = vpack.c.bf16 %v40_v33, %v39_v32  ;;  %v22_v36 = vld [vmem:[%s491_s0 + $0x28] sm:$0xff]  ;;  %v19_v37 = vld [vmem:[%s491_s0 + $0x10] sm:$0xff]  ;;  %v20_v39 = vld [vmem:[%s491_s0 + $0x18] sm:$0xff] }
   0xb   :  { %v23_v38 = vld [vmem:[%s491_s0 + $0x30] sm:$0xff]  ;;  %v24_v40 = vld [vmem:[%s491_s0 + $0x38] sm:$0xff]  ;;  %v221_v45 = vld [vmem:[%s493_s2] ss:$0 sm:$0xff] }
   0xc   :  { %178 = vperm.xlu1 %340, %v156_v19   ;;  %168 = vperm.xlu0 %339, %v154_v20  }
   0xd   :  { %301 = vmatpush3.bf16.msra.mxu0 %v298_v9  ;;  %332 = vmatpush3.bf16.msra.mxu1 %v298_v9 }
   0xe   :  { %303 = vmatprep.subr.bf16.mxu0 %v302_v16  ;;  %325 = vmatprep.subr.bf16.mxu1 %v302_v16 }
  0x10   :  { %188 = vperm.xlu1 %340, %v158_v24   ;;  %183 = vperm.xlu0 %339, %v157_v25  }
  0x11   :  { %305 = vmatpush3.bf16.msra.mxu0 %v302_v16  ;;  %333 = vmatpush3.bf16.msra.mxu1 %v302_v16 }
  0x12   :  { %307 = vmatprep.subr.bf16.mxu0 %v306_v21  ;;  %326 = vmatprep.subr.bf16.mxu1 %v306_v21 }
  0x14   :  { %198 = vperm.xlu1 %340, %v160_v29   ;;  %193 = vperm.xlu0 %339, %v159_v30  }
  0x15   :  { %309 = vmatpush3.bf16.msra.mxu0 %v306_v21  ;;  %334 = vmatpush3.bf16.msra.mxu1 %v306_v21 }
  0x16   :  { %311 = vmatprep.subr.bf16.mxu0 %v310_v26  ;;  %327 = vmatprep.subr.bf16.mxu1 %v310_v26 }
  0x19   :  { %313 = vmatpush3.bf16.msra.mxu0 %v310_v26  ;;  %335 = vmatpush3.bf16.msra.mxu1 %v310_v26 }
  0x1a   :  { %315 = vmatprep.subr.bf16.mxu0 %v314_v31  ;;  %328 = vmatprep.subr.bf16.mxu1 %v314_v31 }
  0x1d   :  { %317 = vmatpush3.bf16.msra.mxu0 %v314_v31  ;;  %336 = vmatpush3.bf16.msra.mxu1 %v314_v31 }
  0x1e   :  { %319 = vmatprep.subr.bf16.mxu0 %v318_v34  ;;  %329 = vmatprep.subr.bf16.mxu1 %v318_v34 }
  0x21   :  { %321 = vmatpush3.bf16.msra.mxu0 %v318_v34  ;;  %337 = vmatpush3.bf16.msra.mxu1 %v318_v34 }
  0x24   :  { %279 = vmatmul.mubr.f32.vlgmr.msra.gmra.mrb[0].mxu0 %v18_v35  ;;  %285 = vmatmul.mubr.f32.vlgmr.msra.gmra.mrb[0].mxu1 %v22_v36 }
  0x25   :  { %281 = vmatprep.mubr.f32.mxu0 %v19_v37  ;;  %287 = vmatprep.mubr.f32.mxu1 %v23_v38 }
  0x28   :  { %282 = vmatmul.mubr.f32.gmra.mrb[2].mxu0 %v20_v39  ;;  %288 = vmatmul.mubr.f32.gmra.mrb[2].mxu1 %v24_v40 }
  0x87   :  { %v174_v41 = vpop.permute.xlu1 %173  ;;  %v164_v42 = vpop.permute.xlu0 %163 }
  0x8b   :  { %v179_v43 = vpop.permute.xlu1 %178  ;;  %v169_v44 = vpop.permute.xlu0 %168 }
  0x8f   :  { %v189_v46 = vpop.permute.xlu1 %188  ;;  %v184_v47 = vpop.permute.xlu0 %183 }
  0x93   :  { %v199_v2 = vpop.permute.xlu1 %198  ;;  %v194_v5 = vpop.permute.xlu0 %193 }
  0xf7   :  { %v280_v48 = vpop.f32.mrb[0].mxu0  ;;  %v286_v49 = vpop.f32.mrb[0].mxu1 }
  0xf8   :  { %v120_v50 = vadd.f32 %v280_v48, %v221_v45  ;;  %v140_v51 = vadd.f32 %v286_v49, %v221_v45  ;;  %v114_v52 = vpop.f32.mrb[1].mxu0  ;;  %v134_v53 = vpop.f32.mrb[1].mxu1 }
  0xf9   :  { %v115_v54 = vadd.f32 %v221_v45, %v114_v52  ;;  %v135_v55 = vadd.f32 %v221_v45, %v134_v53 }
  0xfa   :  { %v202_v56 = vmul.f32 %v169_v44, %v120_v50  ;;  %v206_v57 = vmul.f32 %v189_v46, %v140_v51 }
  0xfb   :  { %v201_v58 = vmul.f32 %v164_v42, %v115_v54  ;;  %v205_v59 = vmul.f32 %v184_v47, %v135_v55  ;;  %v283_v60 = vpop.f32.mrb[2].mxu0  ;;  %v289_v61 = vpop.f32.mrb[2].mxu1 }
  0xfc   :  { %210 = vst [vmem:[%s494_s4 + $0x8] sm:$0xff] %v202_v56  ;;  %214 = vst [vmem:[%s494_s4 + $0x28] sm:$0xff] %v206_v57  ;;  %v130_v62 = vadd.f32 %v283_v60, %v221_v45  ;;  %v150_v63 = vadd.f32 %v289_v61, %v221_v45  ;;  %v124_v0 = vpop.f32.mrb[3].mxu0  ;;  %v144_v1 = vpop.f32.mrb[3].mxu1 }
  0xfd   :  { %209 = vst [vmem:[%s494_s4] sm:$0xff] %v201_v58  ;;  %213 = vst [vmem:[%s494_s4 + $0x20] sm:$0xff] %v205_v59  ;;  %v125_v3 = vadd.f32 %v221_v45, %v124_v0  ;;  %v145_v4 = vadd.f32 %v221_v45, %v144_v1 }
  0xfe   :  { %v204_v6 = vmul.f32 %v179_v43, %v130_v62  ;;  %v208_v7 = vmul.f32 %v199_v2, %v150_v63 }
  0xff   :  { %v203_v8 = vmul.f32 %v174_v41, %v125_v3  ;;  %v207_v9 = vmul.f32 %v194_v5, %v145_v4 }
 0x100   :  { %212 = vst [vmem:[%s494_s4 + $0x18] sm:$0xff] %v204_v6  ;;  %216 = vst [vmem:[%s494_s4 + $0x38] sm:$0xff] %v208_v7 }
 0x101   :  { %211 = vst [vmem:[%s494_s4 + $0x10] sm:$0xff] %v203_v8  ;;  %215 = vst [vmem:[%s494_s4 + $0x30] sm:$0xff] %v207_v9 }

// kernel: lstm_model_forward.3
= control target key start
LH: loop header
LB: loop body
LE: loop exit
PB: predicated region body
PF: predicated region fallthrough
CT: control target
= control target key end

     0   :  { %11 = vsyncpa [#allocation6], 0  ;;  %s863_s21 = smov [#allocation5]   ;;  %s1212_s0 = inlined_call_operand.vmem [shape: f32[64,128], index: 0, kind: input, shape index: {}]   ;;  %s1213_s1 = inlined_call_operand.vmem [shape: f32[8,128], index: 1, kind: input, shape index: {}]   ;;  %s1214_s2 = inlined_call_operand.vmem [shape: f32[8,128], index: 2, kind: input, shape index: {}]   ;;  %s1215_s3 = inlined_call_operand.vmem [shape: f32[128,512], index: 3, kind: input, shape index: {}]   ;;  %s1216_s4 = inlined_call_operand.hbm [shape: f32[128,512], index: 4, kind: input, shape index: {}]   ;;  %s1217_s5 = inlined_call_operand.vmem [shape: f32[1,512], index: 5, kind: input, shape index: {}]   ;;  %s1218_s6 = inlined_call_operand.vmem [shape: f32[64,128], index: 6, kind: output, shape index: {}]  }
   0x1   :  { %s25_s22 = sshll.u32 %s863_s21, 4  ;;  %s831_s25 = scalar_lea.hbm %s1216_s4, 8192  ;;  %s26_s22 = int_to_ptr.vmem [resolvable:$true] %s25_s22 }
   0x2   :  { %p832_p0 = scmp.ne.s32.totalorder %s1216_s4, %s831_s25  ;;  %p835_p1 = scmp.lt.u32.totalorder %s831_s25, %s1216_s4 }
   0x4   :  { %p837_p2 = pnand %p835_p1, %p832_p0 }
   0x6   :  { %840 = shalt.err (!%p837_p2)
}
   0x7   :  { %s841_s30 = scalar_lea.vmem %s26_s22, 8192  ;;  %p846_p4 = scmp.lt.s32.totalorder %s26_s22, %s26_s22 }
   0x8   :  { %p842_p3 = scmp.ne.s32.totalorder %s26_s22, %s841_s30  ;;  %p847_p5 = scmp.lt.s32.totalorder %s841_s30, %s841_s30 }
   0xa   :  { %p848_p6 = por %p847_p5, %p846_p4 }
   0xc   :  { %p849_p7 = pnand %p848_p6, %p842_p3 }
   0xe   :  { %852 = shalt.err (!%p849_p7)
}
   0xf   :  { %s864_s7 = smov 512   ;;  %s865_s8 = smov 32  }
  0x10   :  { %31 = dma.hbm_to_vmem [thread:$0]  %s1216_s4, 8192, %s26_s22, [#allocation6], %s864_s7, %s864_s7, %s865_s8  }
  0x11   :  { %857 = dma.done.wait [#allocation6], 8192  }
  0x12   :  { %858 = vsyncadd [#allocation6], 4294959104  ;;  %v866_v0 = vmov 0.0   ;;  %v41_v1 = vld [vmem:[%s1213_s1] sm:$0xff]  ;;  %v54_v3 = vld [vmem:[%s1215_s3 + $0x8] sm:$0xff] }
  0x13   :  { %203 = vmatprep.mubr.f32.mxu0 %v866_v0  ;;  %316 = vmatprep.mubr.f32.mxu1 %v866_v0  ;;  %v43_v2 = vld [vmem:[%s1214_s2] sm:$0xff]  ;;  %42 = vst [vmem:[#allocation2] sm:$0xff] %v41_v1  ;;  %v58_v4 = vld [vmem:[%s1215_s3 + $0x28] sm:$0xff]  ;;  %v56_v5 = vld [vmem:[%s1215_s3 + $0x18] sm:$0xff] }
  0x14   :  { %44 = vst [vmem:[#allocation3] sm:$0xff] %v43_v2  ;;  %v60_v6 = vld [vmem:[%s1215_s3 + $0x38] sm:$0xff]  ;;  %v674_v7 = vpack.c.bf16 %v58_v4, %v54_v3  ;;  %v53_v9 = vld [vmem:[%s1215_s3] sm:$0xff]  ;;  %v55_v11 = vld [vmem:[%s1215_s3 + $0x10] sm:$0xff] }
  0x15   :  { %v706_v8 = vpack.c.bf16 %v60_v6, %v56_v5  ;;  %v57_v10 = vld [vmem:[%s1215_s3 + $0x20] sm:$0xff]  ;;  %v59_v13 = vld [vmem:[%s1215_s3 + $0x30] sm:$0xff]  ;;  %v62_v14 = vld [vmem:[%s1215_s3 + $0x48] sm:$0xff] }
  0x16   :  { %v676_v12 = vpack.c.bf16 %v57_v10, %v53_v9  ;;  %v66_v15 = vld [vmem:[%s1215_s3 + $0x68] sm:$0xff]  ;;  %675 = vmatprep.subr.bf16.mxu0 %v674_v7  ;;  %v708_v16 = vpack.c.bf16 %v59_v13, %v55_v11  ;;  %v64_v18 = vld [vmem:[%s1215_s3 + $0x58] sm:$0xff]  ;;  %v61_v20 = vld [vmem:[%s1215_s3 + $0x40] sm:$0xff] }
  0x17   :  { %707 = vmatprep.subr.bf16.mxu1 %v706_v8  ;;  %v678_v17 = vpack.c.bf16 %v66_v15, %v62_v14  ;;  %v68_v19 = vld [vmem:[%s1215_s3 + $0x78] sm:$0xff]  ;;  %v65_v22 = vld [vmem:[%s1215_s3 + $0x60] sm:$0xff]  ;;  %v63_v23 = vld [vmem:[%s1215_s3 + $0x50] sm:$0xff] }
  0x18   :  { %677 = vmatpush1.bf16.msra.mxu0 %v676_v12  ;;  %v710_v21 = vpack.c.bf16 %v68_v19, %v64_v18  ;;  %v67_v24 = vld [vmem:[%s1215_s3 + $0x70] sm:$0xff]  ;;  %709 = vmatpush1.bf16.msra.mxu1 %v708_v16  ;;  %v680_v25 = vpack.c.bf16 %v65_v22, %v61_v20  ;;  %v70_v27 = vld [vmem:[%s1215_s3 + $0x88] sm:$0xff]  ;;  %v72_v29 = vld [vmem:[%s1215_s3 + $0x98] sm:$0xff] }
  0x19   :  { %679 = vmatprep.subr.bf16.mxu0 %v678_v17  ;;  %v712_v26 = vpack.c.bf16 %v67_v24, %v63_v23  ;;  %v74_v28 = vld [vmem:[%s1215_s3 + $0xa8] sm:$0xff]  ;;  %v76_v31 = vld [vmem:[%s1215_s3 + $0xb8] sm:$0xff]  ;;  %v69_v32 = vld [vmem:[%s1215_s3 + $0x80] sm:$0xff] }
  0x1a   :  { %711 = vmatprep.subr.bf16.mxu1 %v710_v21  ;;  %v682_v30 = vpack.c.bf16 %v74_v28, %v70_v27  ;;  %v73_v33 = vld [vmem:[%s1215_s3 + $0xa0] sm:$0xff]  ;;  %v714_v34 = vpack.c.bf16 %v76_v31, %v72_v29  ;;  %v71_v35 = vld [vmem:[%s1215_s3 + $0x90] sm:$0xff]  ;;  %v78_v37 = vld [vmem:[%s1215_s3 + $0xc8] sm:$0xff] }
  0x1b   :  { %v75_v36 = vld [vmem:[%s1215_s3 + $0xb0] sm:$0xff]  ;;  %v684_v38 = vpack.c.bf16 %v73_v33, %v69_v32  ;;  %v82_v39 = vld [vmem:[%s1215_s3 + $0xe8] sm:$0xff]  ;;  %v80_v40 = vld [vmem:[%s1215_s3 + $0xd8] sm:$0xff] }
  0x1c   :  { %681 = vmatpush1.bf16.msra.mxu0 %v680_v25  ;;  %v84_v41 = vld [vmem:[%s1215_s3 + $0xf8] sm:$0xff]  ;;  %713 = vmatpush1.bf16.msra.mxu1 %v712_v26  ;;  %v716_v42 = vpack.c.bf16 %v75_v36, %v71_v35  ;;  %v686_v43 = vpack.c.bf16 %v82_v39, %v78_v37  ;;  %v77_v44 = vld [vmem:[%s1215_s3 + $0xc0] sm:$0xff]  ;;  %v79_v46 = vld [vmem:[%s1215_s3 + $0xd0] sm:$0xff] }
  0x1d   :  { %683 = vmatprep.subr.bf16.mxu0 %v682_v30  ;;  %v81_v45 = vld [vmem:[%s1215_s3 + $0xe0] sm:$0xff]  ;;  %715 = vmatprep.subr.bf16.mxu1 %v714_v34  ;;  %v718_v47 = vpack.c.bf16 %v84_v41, %v80_v40  ;;  %v83_v48 = vld [vmem:[%s1215_s3 + $0xf0] sm:$0xff]  ;;  %v86_v49 = vld [vmem:[%s1215_s3 + $0x108] sm:$0xff] }
  0x1e   :  { %v90_v50 = vld [vmem:[%s1215_s3 + $0x128] sm:$0xff]  ;;  %v88_v51 = vld [vmem:[%s1215_s3 + $0x118] sm:$0xff]  ;;  %v688_v53 = vpack.c.bf16 %v81_v45, %v77_v44  ;;  %v720_v54 = vpack.c.bf16 %v83_v48, %v79_v46  ;;  %v85_v56 = vld [vmem:[%s1215_s3 + $0x100] sm:$0xff]  ;;  %v119_v44 = vlaneseq }
  0x1f   :  { %v92_v52 = vld [vmem:[%s1215_s3 + $0x138] sm:$0xff]  ;;  %v690_v55 = vpack.c.bf16 %v90_v50, %v86_v49  ;;  %v89_v57 = vld [vmem:[%s1215_s3 + $0x120] sm:$0xff]  ;;  %v87_v58 = vld [vmem:[%s1215_s3 + $0x110] sm:$0xff] }
  0x20   :  { %685 = vmatpush1.bf16.msra.mxu0 %v684_v38  ;;  %717 = vmatpush1.bf16.msra.mxu1 %v716_v42  ;;  %v722_v59 = vpack.c.bf16 %v92_v52, %v88_v51  ;;  %v91_v60 = vld [vmem:[%s1215_s3 + $0x130] sm:$0xff]  ;;  %v94_v61 = vld [vmem:[%s1215_s3 + $0x148] sm:$0xff]  ;;  %v96_v63 = vld [vmem:[%s1215_s3 + $0x158] sm:$0xff]  ;;  %v692_v2 = vpack.c.bf16 %v89_v57, %v85_v56  ;;  %v120_v45 = vshrl.u32 %v119_v44, 7 }
  0x21   :  { %687 = vmatprep.subr.bf16.mxu0 %v686_v43  ;;  %719 = vmatprep.subr.bf16.mxu1 %v718_v47  ;;  %v98_v62 = vld [vmem:[%s1215_s3 + $0x168] sm:$0xff]  ;;  %v100_v1 = vld [vmem:[%s1215_s3 + $0x178] sm:$0xff]  ;;  %v724_v3 = vpack.c.bf16 %v91_v60, %v87_v58  ;;  %v93_v5 = vld [vmem:[%s1215_s3 + $0x140] sm:$0xff] }
  0x22   :  { %v694_v4 = vpack.c.bf16 %v98_v62, %v94_v61  ;;  %v97_v6 = vld [vmem:[%s1215_s3 + $0x160] sm:$0xff]  ;;  %v95_v7 = vld [vmem:[%s1215_s3 + $0x150] sm:$0xff]  ;;  %v726_v8 = vpack.c.bf16 %v100_v1, %v96_v63  ;;  %v102_v10 = vld [vmem:[%s1215_s3 + $0x188] sm:$0xff]  ;;  %v121_v46 = vsub.s32 0, %v120_v45  ;;  %v129_v48 = vsub.s32 2, %v120_v45 }
  0x23   :  { %v99_v9 = vld [vmem:[%s1215_s3 + $0x170] sm:$0xff]  ;;  %v106_v11 = vld [vmem:[%s1215_s3 + $0x1a8] sm:$0xff]  ;;  %v104_v12 = vld [vmem:[%s1215_s3 + $0x198] sm:$0xff]  ;;  %v696_v14 = vpack.c.bf16 %v97_v6, %v93_v5  ;;  %v125_v49 = vsub.s32 1, %v120_v45  ;;  %v133_v50 = vsub.s32 3, %v120_v45 }
  0x24   :  { %689 = vmatpush1.bf16.msra.mxu0 %v688_v53  ;;  %721 = vmatpush1.bf16.msra.mxu1 %v720_v54  ;;  %v108_v13 = vld [vmem:[%s1215_s3 + $0x1b8] sm:$0xff]  ;;  %v728_v15 = vpack.c.bf16 %v99_v9, %v95_v7  ;;  %v698_v16 = vpack.c.bf16 %v106_v11, %v102_v10  ;;  %v101_v17 = vld [vmem:[%s1215_s3 + $0x180] sm:$0xff]  ;;  %v103_v19 = vld [vmem:[%s1215_s3 + $0x190] sm:$0xff] }
  0x25   :  { %691 = vmatprep.subr.bf16.mxu0 %v690_v55  ;;  %723 = vmatprep.subr.bf16.mxu1 %v722_v59  ;;  %v105_v18 = vld [vmem:[%s1215_s3 + $0x1a0] sm:$0xff]  ;;  %v730_v20 = vpack.c.bf16 %v108_v13, %v104_v12  ;;  %v107_v21 = vld [vmem:[%s1215_s3 + $0x1b0] sm:$0xff]  ;;  %v110_v22 = vld [vmem:[%s1215_s3 + $0x1c8] sm:$0xff] }
  0x26   :  { %v114_v23 = vld [vmem:[%s1215_s3 + $0x1e8] sm:$0xff]  ;;  %v112_v24 = vld [vmem:[%s1215_s3 + $0x1d8] sm:$0xff]  ;;  %v700_v26 = vpack.c.bf16 %v105_v18, %v101_v17  ;;  %v732_v27 = vpack.c.bf16 %v107_v21, %v103_v19  ;;  %v109_v29 = vld [vmem:[%s1215_s3 + $0x1c0] sm:$0xff] }
  0x27   :  { %v116_v25 = vld [vmem:[%s1215_s3 + $0x1f8] sm:$0xff]  ;;  %v702_v28 = vpack.c.bf16 %v114_v23, %v110_v22  ;;  %v113_v30 = vld [vmem:[%s1215_s3 + $0x1e0] sm:$0xff]  ;;  %v111_v32 = vld [vmem:[%s1215_s3 + $0x1d0] sm:$0xff] }
  0x28   :  { %693 = vmatpush1.bf16.msra.mxu0 %v692_v2  ;;  %725 = vmatpush1.bf16.msra.mxu1 %v724_v3  ;;  %v734_v31 = vpack.c.bf16 %v116_v25, %v112_v24  ;;  %v115_v33 = vld [vmem:[%s1215_s3 + $0x1f0] sm:$0xff]  ;;  %v704_v34 = vpack.c.bf16 %v113_v30, %v109_v29  ;;  %v45_v36 = vld [vmem:[%s1212_s0] sm:$0xff]  ;;  %v46_v37 = vld [vmem:[%s1212_s0 + $0x8] sm:$0xff] }
  0x29   :  { %695 = vmatprep.subr.bf16.mxu0 %v694_v4  ;;  %727 = vmatprep.subr.bf16.mxu1 %v726_v8  ;;  %v736_v35 = vpack.c.bf16 %v115_v33, %v111_v32  ;;  %v47_v38 = vld [vmem:[%s1212_s0 + $0x10] sm:$0xff]  ;;  %v48_v39 = vld [vmem:[%s1212_s0 + $0x18] sm:$0xff]  ;;  %v49_v40 = vld [vmem:[%s1212_s0 + $0x20] sm:$0xff] }
  0x2a   :  { %v50_v41 = vld [vmem:[%s1212_s0 + $0x28] sm:$0xff]  ;;  %v51_v42 = vld [vmem:[%s1212_s0 + $0x30] sm:$0xff]  ;;  %v52_v43 = vld [vmem:[%s1212_s0 + $0x38] sm:$0xff]  ;;  %s1196_s0 = smov 0  }
  0x2b   :  { %v117_v47 = vld [vmem:[%s1217_s5] sm:$0xf] }
  0x2c   :  { %697 = vmatpush1.bf16.msra.mxu0 %v696_v14  ;;  %729 = vmatpush1.bf16.msra.mxu1 %v728_v15  ;;  %v1156_v51 = vrot.slane %v117_v47, %v121_v46  ;;  %v1158_v52 = vrot.slane %v117_v47, %v129_v48  ;;  %v1160_v53 = vrot.slane %v117_v47, %v125_v49 }
  0x2d   :  { %699 = vmatprep.subr.bf16.mxu0 %v698_v16  ;;  %731 = vmatprep.subr.bf16.mxu1 %v730_v20  ;;  %v1162_v54 = vrot.slane %v117_v47, %v133_v50 }
  0x30   :  { %701 = vmatpush1.bf16.msra.mxu0 %v700_v26  ;;  %733 = vmatpush1.bf16.msra.mxu1 %v732_v27 }
  0x31   :  { %703 = vmatprep.subr.bf16.mxu0 %v702_v28  ;;  %735 = vmatprep.subr.bf16.mxu1 %v734_v31 }
  0x34   :  { %705 = vmatpush1.bf16.msra.mxu0 %v704_v34  ;;  %737 = vmatpush1.bf16.msra.mxu1 %v736_v35 }
  0x37   :  { %204 = vmatmul.mubr.f32.vlgmr.msra.gmra.mrb[0].mxu0 %v45_v36  ;;  %317 = vmatmul.mubr.f32.vlgmr.msra.gmra.mrb[0].mxu1 %v45_v36 }
  0x38   :  { %209 = vmatprep.mubr.f32.mxu0 %v866_v0  ;;  %322 = vmatprep.mubr.f32.mxu1 %v866_v0 }
  0x3b   :  { %210 = vmatmul.mubr.f32.gmra.mrb[2].mxu0 %v46_v37  ;;  %323 = vmatmul.mubr.f32.gmra.mrb[2].mxu1 %v46_v37 }
  0x3c   :  { %215 = vmatprep.mubr.f32.mxu0 %v866_v0  ;;  %328 = vmatprep.mubr.f32.mxu1 %v866_v0 }
  0x3f   :  { %216 = vmatmul.mubr.f32.gmra.mrb[4].mxu0 %v47_v38  ;;  %329 = vmatmul.mubr.f32.gmra.mrb[4].mxu1 %v47_v38 }
  0x40   :  { %221 = vmatprep.mubr.f32.mxu0 %v866_v0  ;;  %334 = vmatprep.mubr.f32.mxu1 %v866_v0 }
  0x43   :  { %222 = vmatmul.mubr.f32.gmra.mrb[6].mxu0 %v48_v39  ;;  %335 = vmatmul.mubr.f32.gmra.mrb[6].mxu1 %v48_v39 }
  0x44   :  { %227 = vmatprep.mubr.f32.mxu0 %v866_v0  ;;  %340 = vmatprep.mubr.f32.mxu1 %v866_v0 }
  0x47   :  { %228 = vmatmul.mubr.f32.gmra.mrb[8].mxu0 %v49_v40  ;;  %341 = vmatmul.mubr.f32.gmra.mrb[8].mxu1 %v49_v40 }
  0x48   :  { %233 = vmatprep.mubr.f32.mxu0 %v866_v0  ;;  %346 = vmatprep.mubr.f32.mxu1 %v866_v0 }
  0x4b   :  { %234 = vmatmul.mubr.f32.gmra.mrb[10].mxu0 %v50_v41  ;;  %347 = vmatmul.mubr.f32.gmra.mrb[10].mxu1 %v50_v41 }
  0x4c   :  { %239 = vmatprep.mubr.f32.mxu0 %v866_v0  ;;  %352 = vmatprep.mubr.f32.mxu1 %v866_v0 }
  0x4f   :  { %240 = vmatmul.mubr.f32.gmra.mrb[12].mxu0 %v51_v42  ;;  %353 = vmatmul.mubr.f32.gmra.mrb[12].mxu1 %v51_v42 }
  0x50   :  { %245 = vmatprep.mubr.f32.mxu0 %v866_v0  ;;  %358 = vmatprep.mubr.f32.mxu1 %v866_v0 }
  0x53   :  { %246 = vmatmul.mubr.f32.gmra.mrb[14].mxu0 %v52_v43  ;;  %359 = vmatmul.mubr.f32.gmra.mrb[14].mxu1 %v52_v43 }
 0x10a   :  { %v205_v0 = vpop.f32.mrb[0].mxu0  ;;  %v318_v56 = vpop.f32.mrb[0].mxu1 }
 0x10b   :  { %v206_v55 = vadd.f32 %v205_v0, %v1156_v51  ;;  %v207_v57 = vpop.f32.mrb[1].mxu0  ;;  %v319_v58 = vadd.f32 %v318_v56, %v1158_v52  ;;  %v320_v60 = vpop.f32.mrb[1].mxu1 }
 0x10c   :  { %v208_v59 = vadd.f32 %v207_v57, %v1160_v53  ;;  %v321_v61 = vadd.f32 %v320_v60, %v1162_v54 }
 0x10d   :  { %365 = vst [vmem:[#allocation4] sm:$0xff] %v206_v55  ;;  %367 = vst [vmem:[#allocation4 + $0x10] sm:$0xff] %v319_v58 }
 0x10e   :  { %366 = vst [vmem:[#allocation4 + $0x8] sm:$0xff] %v208_v59  ;;  %v211_v62 = vpop.f32.mrb[2].mxu0  ;;  %368 = vst [vmem:[#allocation4 + $0x18] sm:$0xff] %v321_v61  ;;  %v324_v1 = vpop.f32.mrb[2].mxu1 }
 0x10f   :  { %v212_v63 = vadd.f32 %v211_v62, %v1156_v51  ;;  %v213_v2 = vpop.f32.mrb[3].mxu0  ;;  %v325_v3 = vadd.f32 %v324_v1, %v1158_v52  ;;  %v326_v5 = vpop.f32.mrb[3].mxu1 }
 0x110   :  { %v214_v4 = vadd.f32 %v213_v2, %v1160_v53  ;;  %v327_v6 = vadd.f32 %v326_v5, %v1162_v54 }
 0x111   :  { %369 = vst [vmem:[#allocation4 + $0x20] sm:$0xff] %v212_v63  ;;  %371 = vst [vmem:[#allocation4 + $0x30] sm:$0xff] %v325_v3 }
 0x112   :  { %370 = vst [vmem:[#allocation4 + $0x28] sm:$0xff] %v214_v4  ;;  %v217_v7 = vpop.f32.mrb[4].mxu0  ;;  %372 = vst [vmem:[#allocation4 + $0x38] sm:$0xff] %v327_v6  ;;  %v330_v9 = vpop.f32.mrb[4].mxu1 }
 0x113   :  { %v218_v8 = vadd.f32 %v217_v7, %v1156_v51  ;;  %v219_v10 = vpop.f32.mrb[5].mxu0  ;;  %v331_v11 = vadd.f32 %v330_v9, %v1158_v52  ;;  %v332_v13 = vpop.f32.mrb[5].mxu1 }
 0x114   :  { %v220_v12 = vadd.f32 %v219_v10, %v1160_v53  ;;  %v333_v14 = vadd.f32 %v332_v13, %v1162_v54 }
 0x115   :  { %373 = vst [vmem:[#allocation4 + $0x40] sm:$0xff] %v218_v8  ;;  %375 = vst [vmem:[#allocation4 + $0x50] sm:$0xff] %v331_v11 }
 0x116   :  { %374 = vst [vmem:[#allocation4 + $0x48] sm:$0xff] %v220_v12  ;;  %v223_v15 = vpop.f32.mrb[6].mxu0  ;;  %376 = vst [vmem:[#allocation4 + $0x58] sm:$0xff] %v333_v14  ;;  %v336_v17 = vpop.f32.mrb[6].mxu1 }
 0x117   :  { %v224_v16 = vadd.f32 %v223_v15, %v1156_v51  ;;  %v225_v18 = vpop.f32.mrb[7].mxu0  ;;  %v337_v19 = vadd.f32 %v336_v17, %v1158_v52  ;;  %v338_v21 = vpop.f32.mrb[7].mxu1 }
 0x118   :  { %v226_v20 = vadd.f32 %v225_v18, %v1160_v53  ;;  %v339_v22 = vadd.f32 %v338_v21, %v1162_v54 }
 0x119   :  { %377 = vst [vmem:[#allocation4 + $0x60] sm:$0xff] %v224_v16  ;;  %379 = vst [vmem:[#allocation4 + $0x70] sm:$0xff] %v337_v19 }
 0x11a   :  { %378 = vst [vmem:[#allocation4 + $0x68] sm:$0xff] %v226_v20  ;;  %v229_v23 = vpop.f32.mrb[8].mxu0  ;;  %380 = vst [vmem:[#allocation4 + $0x78] sm:$0xff] %v339_v22  ;;  %v342_v25 = vpop.f32.mrb[8].mxu1 }
 0x11b   :  { %v230_v24 = vadd.f32 %v229_v23, %v1156_v51  ;;  %v231_v26 = vpop.f32.mrb[9].mxu0  ;;  %v343_v27 = vadd.f32 %v342_v25, %v1158_v52  ;;  %v344_v29 = vpop.f32.mrb[9].mxu1 }
 0x11c   :  { %v232_v28 = vadd.f32 %v231_v26, %v1160_v53  ;;  %v345_v30 = vadd.f32 %v344_v29, %v1162_v54 }
 0x11d   :  { %381 = vst [vmem:[#allocation4 + $0x80] sm:$0xff] %v230_v24  ;;  %383 = vst [vmem:[#allocation4 + $0x90] sm:$0xff] %v343_v27 }
 0x11e   :  { %382 = vst [vmem:[#allocation4 + $0x88] sm:$0xff] %v232_v28  ;;  %v235_v31 = vpop.f32.mrb[10].mxu0  ;;  %384 = vst [vmem:[#allocation4 + $0x98] sm:$0xff] %v345_v30  ;;  %v348_v33 = vpop.f32.mrb[10].mxu1 }
 0x11f   :  { %v236_v32 = vadd.f32 %v235_v31, %v1156_v51  ;;  %v237_v34 = vpop.f32.mrb[11].mxu0  ;;  %v349_v35 = vadd.f32 %v348_v33, %v1158_v52  ;;  %v350_v37 = vpop.f32.mrb[11].mxu1 }
 0x120   :  { %v238_v36 = vadd.f32 %v237_v34, %v1160_v53  ;;  %v351_v38 = vadd.f32 %v350_v37, %v1162_v54 }
 0x121   :  { %385 = vst [vmem:[#allocation4 + $0xa0] sm:$0xff] %v236_v32  ;;  %387 = vst [vmem:[#allocation4 + $0xb0] sm:$0xff] %v349_v35 }
 0x122   :  { %386 = vst [vmem:[#allocation4 + $0xa8] sm:$0xff] %v238_v36  ;;  %v241_v39 = vpop.f32.mrb[12].mxu0  ;;  %388 = vst [vmem:[#allocation4 + $0xb8] sm:$0xff] %v351_v38  ;;  %v354_v41 = vpop.f32.mrb[12].mxu1 }
 0x123   :  { %v242_v40 = vadd.f32 %v241_v39, %v1156_v51  ;;  %v243_v42 = vpop.f32.mrb[13].mxu0  ;;  %v355_v43 = vadd.f32 %v354_v41, %v1158_v52  ;;  %v356_v45 = vpop.f32.mrb[13].mxu1 }
 0x124   :  { %v244_v44 = vadd.f32 %v243_v42, %v1160_v53  ;;  %v357_v46 = vadd.f32 %v356_v45, %v1162_v54 }
 0x125   :  { %389 = vst [vmem:[#allocation4 + $0xc0] sm:$0xff] %v242_v40  ;;  %391 = vst [vmem:[#allocation4 + $0xd0] sm:$0xff] %v355_v43 }
 0x126   :  { %390 = vst [vmem:[#allocation4 + $0xc8] sm:$0xff] %v244_v44  ;;  %v247_v47 = vpop.f32.mrb[14].mxu0  ;;  %392 = vst [vmem:[#allocation4 + $0xd8] sm:$0xff] %v357_v46  ;;  %v360_v49 = vpop.f32.mrb[14].mxu1 }
 0x127   :  { %v248_v48 = vadd.f32 %v247_v47, %v1156_v51  ;;  %v249_v50 = vpop.f32.mrb[15].mxu0  ;;  %v361_v0 = vadd.f32 %v360_v49, %v1158_v52  ;;  %v362_v56 = vpop.f32.mrb[15].mxu1 }
 0x128   :  { %v250_v55 = vadd.f32 %v249_v50, %v1160_v53  ;;  %v363_v57 = vadd.f32 %v362_v56, %v1162_v54 }
 0x129   :  { %393 = vst [vmem:[#allocation4 + $0xe0] sm:$0xff] %v248_v48  ;;  %395 = vst [vmem:[#allocation4 + $0xf0] sm:$0xff] %v361_v0 }
 0x12a   :  { %394 = vst [vmem:[#allocation4 + $0xe8] sm:$0xff] %v250_v55  ;;  %396 = vst [vmem:[#allocation4 + $0xf8] sm:$0xff] %v363_v57 }
 0x12b LB: > { %v416_v51 = vld [vmem:[#allocation5 + $0x8] sm:$0xff]  ;;  %v415_v59 = vld [vmem:[#allocation5] sm:$0xff]  ;;  %v867_v62 = vmov 0.0   ;;  %v418_v10 = vld [vmem:[#allocation5 + $0x18] sm:$0xff]  ;;  %s667_s5 = sshll.u32 %s861_s0, 3  ;;  %s402_s0 = sadd.s32 1, %s861_s0   ;;  %s861_s0 = sphi %s1196_s0, %s402_s0  }
 0x12c   : > { %v420_v58 = vld [vmem:[#allocation5 + $0x28] sm:$0xff]  ;;  %v419_v60 = vld [vmem:[#allocation5 + $0x20] sm:$0xff]  ;;  %543 = vmatprep.mubr.f32.mxu0 %v867_v62  ;;  %614 = vmatprep.mubr.f32.mxu1 %v867_v62  ;;  %v422_v11 = vld [vmem:[#allocation5 + $0x38] sm:$0xff]  ;;  %s406_s22 = sshra.s32 %s667_s5, 3  ;;  %s651_s27 = scalar_lea.vmem %s1218_s6, %s667_s5 }
 0x12d   : > { %v738_v52 = vpack.c.bf16 %v420_v58, %v416_v51  ;;  %v424_v53 = vld [vmem:[#allocation5 + $0x48] sm:$0xff]  ;;  %v740_v54 = vpack.c.bf16 %v419_v60, %v415_v59  ;;  %v423_v1 = vld [vmem:[#allocation5 + $0x40] sm:$0xff]  ;;  %v770_v13 = vpack.c.bf16 %v422_v11, %v418_v10  ;;  %v417_v14 = vld [vmem:[#allocation5 + $0x10] sm:$0xff]  ;;  %s673_s23 = sshll.u32 %s406_s22, 5  ;;  %p399_p8 = scmp.ge.s32.totalorder %s402_s0, 8  }
 0x12e   : > { %v428_v61 = vld [vmem:[#allocation5 + $0x68] sm:$0xff]  ;;  %v427_v2 = vld [vmem:[#allocation5 + $0x60] sm:$0xff]  ;;  %v421_v15 = vld [vmem:[#allocation5 + $0x30] sm:$0xff]  ;;  %s410_s24 = scalar_lea.vmem [#allocation4], %s673_s23 }
 0x12f   : > { %v742_v63 = vpack.c.bf16 %v428_v61, %v424_v53  ;;  %v432_v3 = vld [vmem:[#allocation5 + $0x88] sm:$0xff]  ;;  %739 = vmatprep.subr.bf16.mxu0 %v738_v52  ;;  %v744_v5 = vpack.c.bf16 %v427_v2, %v423_v1  ;;  %v431_v6 = vld [vmem:[#allocation5 + $0x80] sm:$0xff]  ;;  %v772_v16 = vpack.c.bf16 %v421_v15, %v417_v14  ;;  %771 = vmatprep.subr.bf16.mxu1 %v770_v13  ;;  %v426_v18 = vld [vmem:[#allocation5 + $0x58] sm:$0xff] }
 0x130   : > { %v436_v4 = vld [vmem:[#allocation5 + $0xa8] sm:$0xff]  ;;  %741 = vmatpush1.bf16.msra.mxu0 %v740_v54  ;;  %v435_v7 = vld [vmem:[#allocation5 + $0xa0] sm:$0xff]  ;;  %v430_v19 = vld [vmem:[#allocation5 + $0x78] sm:$0xff] }
 0x131   : > { %743 = vmatprep.subr.bf16.mxu0 %v742_v63  ;;  %v746_v8 = vpack.c.bf16 %v436_v4, %v432_v3  ;;  %v440_v9 = vld [vmem:[#allocation5 + $0xc8] sm:$0xff]  ;;  %v748_v17 = vpack.c.bf16 %v435_v7, %v431_v6  ;;  %v425_v20 = vld [vmem:[#allocation5 + $0x50] sm:$0xff]  ;;  %v439_v22 = vld [vmem:[#allocation5 + $0xc0] sm:$0xff]  ;;  %773 = vmatpush1.bf16.msra.mxu1 %v772_v16  ;;  %v774_v24 = vpack.c.bf16 %v430_v19, %v426_v18 }
 0x132   : > { %v444_v12 = vld [vmem:[#allocation5 + $0xe8] sm:$0xff]  ;;  %v443_v23 = vld [vmem:[#allocation5 + $0xe0] sm:$0xff]  ;;  %v429_v25 = vld [vmem:[#allocation5 + $0x70] sm:$0xff] }
 0x133   : > { %v750_v21 = vpack.c.bf16 %v444_v12, %v440_v9  ;;  %v448_v26 = vld [vmem:[#allocation5 + $0x108] sm:$0xff]  ;;  %v776_v28 = vpack.c.bf16 %v429_v25, %v425_v20  ;;  %v434_v29 = vld [vmem:[#allocation5 + $0x98] sm:$0xff]  ;;  %775 = vmatprep.subr.bf16.mxu1 %v774_v24  ;;  %v433_v31 = vld [vmem:[#allocation5 + $0x90] sm:$0xff]  ;;  %v752_v33 = vpack.c.bf16 %v443_v23, %v439_v22 }
 0x134   : > { %745 = vmatpush1.bf16.msra.mxu0 %v744_v5  ;;  %v452_v27 = vld [vmem:[#allocation5 + $0x128] sm:$0xff]  ;;  %v438_v30 = vld [vmem:[#allocation5 + $0xb8] sm:$0xff]  ;;  %v437_v32 = vld [vmem:[#allocation5 + $0xb0] sm:$0xff] }
 0x135   : > { %747 = vmatprep.subr.bf16.mxu0 %v746_v8  ;;  %v447_v34 = vld [vmem:[#allocation5 + $0x100] sm:$0xff]  ;;  %v778_v36 = vpack.c.bf16 %v438_v30, %v434_v29  ;;  %v754_v37 = vpack.c.bf16 %v452_v27, %v448_v26  ;;  %777 = vmatpush1.bf16.msra.mxu1 %v776_v28  ;;  %v456_v38 = vld [vmem:[#allocation5 + $0x148] sm:$0xff]  ;;  %v780_v39 = vpack.c.bf16 %v437_v32, %v433_v31  ;;  %v442_v40 = vld [vmem:[#allocation5 + $0xd8] sm:$0xff] }
 0x136   : > { %v451_v35 = vld [vmem:[#allocation5 + $0x120] sm:$0xff]  ;;  %v446_v41 = vld [vmem:[#allocation5 + $0xf8] sm:$0xff]  ;;  %v460_v42 = vld [vmem:[#allocation5 + $0x168] sm:$0xff] }
 0x137   : > { %779 = vmatprep.subr.bf16.mxu1 %v778_v36  ;;  %v782_v43 = vpack.c.bf16 %v446_v41, %v442_v40  ;;  %v441_v44 = vld [vmem:[#allocation5 + $0xd0] sm:$0xff]  ;;  %v756_v46 = vpack.c.bf16 %v451_v35, %v447_v34  ;;  %v450_v47 = vld [vmem:[#allocation5 + $0x118] sm:$0xff]  ;;  %v758_v49 = vpack.c.bf16 %v460_v42, %v456_v38  ;;  %v455_v50 = vld [vmem:[#allocation5 + $0x140] sm:$0xff] }
 0x138   : > { %749 = vmatpush1.bf16.msra.mxu0 %v748_v17  ;;  %v445_v45 = vld [vmem:[#allocation5 + $0xf0] sm:$0xff]  ;;  %v454_v48 = vld [vmem:[#allocation5 + $0x138] sm:$0xff]  ;;  %v459_v0 = vld [vmem:[#allocation5 + $0x160] sm:$0xff] }
 0x139   : > { %751 = vmatprep.subr.bf16.mxu0 %v750_v21  ;;  %781 = vmatpush1.bf16.msra.mxu1 %v780_v39  ;;  %v464_v55 = vld [vmem:[#allocation5 + $0x188] sm:$0xff]  ;;  %v784_v56 = vpack.c.bf16 %v445_v45, %v441_v44  ;;  %v786_v51 = vpack.c.bf16 %v454_v48, %v450_v47  ;;  %v449_v58 = vld [vmem:[#allocation5 + $0x110] sm:$0xff]  ;;  %v458_v52 = vld [vmem:[#allocation5 + $0x158] sm:$0xff]  ;;  %v760_v53 = vpack.c.bf16 %v459_v0, %v455_v50 }
 0x13a   : > { %v468_v57 = vld [vmem:[#allocation5 + $0x1a8] sm:$0xff]  ;;  %783 = vmatprep.subr.bf16.mxu1 %v782_v43  ;;  %v453_v59 = vld [vmem:[#allocation5 + $0x130] sm:$0xff]  ;;  %v462_v60 = vld [vmem:[#allocation5 + $0x178] sm:$0xff] }
 0x13b   : > { %v762_v61 = vpack.c.bf16 %v468_v57, %v464_v55  ;;  %v463_v62 = vld [vmem:[#allocation5 + $0x180] sm:$0xff]  ;;  %v472_v63 = vld [vmem:[#allocation5 + $0x1c8] sm:$0xff]  ;;  %v788_v1 = vpack.c.bf16 %v453_v59, %v449_v58  ;;  %v790_v3 = vpack.c.bf16 %v462_v60, %v458_v52  ;;  %v457_v4 = vld [vmem:[#allocation5 + $0x150] sm:$0xff] }
 0x13c   : > { %753 = vmatpush1.bf16.msra.mxu0 %v752_v33  ;;  %v467_v54 = vld [vmem:[#allocation5 + $0x1a0] sm:$0xff]  ;;  %v476_v2 = vld [vmem:[#allocation5 + $0x1e8] sm:$0xff]  ;;  %v461_v5 = vld [vmem:[#allocation5 + $0x170] sm:$0xff] }
 0x13d   : > { %755 = vmatprep.subr.bf16.mxu0 %v754_v37  ;;  %785 = vmatpush1.bf16.msra.mxu1 %v784_v56  ;;  %v466_v6 = vld [vmem:[#allocation5 + $0x198] sm:$0xff]  ;;  %v764_v8 = vpack.c.bf16 %v467_v54, %v463_v62  ;;  %v766_v9 = vpack.c.bf16 %v476_v2, %v472_v63  ;;  %v471_v10 = vld [vmem:[#allocation5 + $0x1c0] sm:$0xff]  ;;  %v792_v12 = vpack.c.bf16 %v461_v5, %v457_v4  ;;  %v465_v14 = vld [vmem:[#allocation5 + $0x190] sm:$0xff] }
 0x13e   : > { %787 = vmatprep.subr.bf16.mxu1 %v786_v51  ;;  %v470_v7 = vld [vmem:[#allocation5 + $0x1b8] sm:$0xff]  ;;  %v475_v11 = vld [vmem:[#allocation5 + $0x1e0] sm:$0xff]  ;;  %v469_v15 = vld [vmem:[#allocation5 + $0x1b0] sm:$0xff] }
 0x13f   : > { %v794_v13 = vpack.c.bf16 %v470_v7, %v466_v6  ;;  %v474_v16 = vld [vmem:[#allocation5 + $0x1d8] sm:$0xff]  ;;  %v768_v18 = vpack.c.bf16 %v475_v11, %v471_v10  ;;  %v796_v19 = vpack.c.bf16 %v469_v15, %v465_v14  ;;  %v473_v21 = vld [vmem:[#allocation5 + $0x1d0] sm:$0xff]  ;;  %v414_v33 = vld [vmem:[%s410_s24 + $0x18] sm:$0xff] }
 0x140   : > { %757 = vmatpush1.bf16.msra.mxu0 %v756_v46  ;;  %v478_v17 = vld [vmem:[#allocation5 + $0x1f8] sm:$0xff]  ;;  %v477_v22 = vld [vmem:[#allocation5 + $0x1f0] sm:$0xff]  ;;  %v413_v37 = vld [vmem:[%s410_s24 + $0x10] sm:$0xff] }
 0x141   : > { %759 = vmatprep.subr.bf16.mxu0 %v758_v49  ;;  %789 = vmatpush1.bf16.msra.mxu1 %v788_v1  ;;  %v798_v20 = vpack.c.bf16 %v478_v17, %v474_v16  ;;  %v404_v23 = vld [vmem:[#allocation2] sm:$0xff]  ;;  %v800_v24 = vpack.c.bf16 %v477_v22, %v473_v21  ;;  %v412_v26 = vld [vmem:[%s410_s24 + $0x8] sm:$0xff] }
 0x142   : > { %791 = vmatprep.subr.bf16.mxu1 %v790_v3  ;;  %v411_v25 = vld [vmem:[%s410_s24] sm:$0xff]  ;;  %v405_v46 = vld [vmem:[#allocation3] sm:$0xff] }
 0x144   : > { %761 = vmatpush1.bf16.msra.mxu0 %v760_v53 }
 0x145   : > { %763 = vmatprep.subr.bf16.mxu0 %v762_v61  ;;  %793 = vmatpush1.bf16.msra.mxu1 %v792_v12 }
 0x146   : > { %795 = vmatprep.subr.bf16.mxu1 %v794_v13 }
 0x148   : > { %765 = vmatpush1.bf16.msra.mxu0 %v764_v8 }
 0x149   : > { %767 = vmatprep.subr.bf16.mxu0 %v766_v9  ;;  %797 = vmatpush1.bf16.msra.mxu1 %v796_v19 }
 0x14a   : > { %799 = vmatprep.subr.bf16.mxu1 %v798_v20 }
 0x14c   : > { %769 = vmatpush1.bf16.msra.mxu0 %v768_v18 }
 0x14d   : > { %801 = vmatpush1.bf16.msra.mxu1 %v800_v24 }
 0x14f   : > { %544 = vmatmul.mubr.f32.vlgmr.msra.gmra.mrb[0].mxu0 %v404_v23 }
 0x150   : > { %615 = vmatmul.mubr.f32.vlgmr.msra.gmra.mrb[0].mxu1 %v404_v23 }
 0x222   : > { %v545_v27 = vpop.f32.mrb[0].mxu0 }
 0x223   : > { %v621_v28 = vadd.f32 %v545_v27, %v411_v25  ;;  %v547_v29 = vpop.f32.mrb[1].mxu0  ;;  %v616_v34 = vpop.f32.mrb[0].mxu1 }
 0x224   : > { %v622_v30 = vadd.f32 %v547_v29, %v412_v26  ;;  %v618_v35 = vpop.f32.mrb[1].mxu1  ;;  %v623_v39 = vadd.f32 %v616_v34, %v413_v37 }
 0x225   : > { %v670_v31 = vmul.f32 -1.442695, %v621_v28  ;;  %v624_v36 = vadd.f32 %v618_v35, %v414_v33 }
 0x226   : > { %v671_v32 = vmul.f32 -1.442695, %v622_v30 }
 0x227   : > { %815 = vpow2.f32 %v670_v31  ;;  %v672_v38 = vmul.f32 -1.442695, %v624_v36 }
 0x228   : > { %817 = vpow2.f32 %v671_v32 }
 0x229   : > { %819 = vpow2.f32 %v672_v38 }
 0x22a   : > { %821 = vtanh.f32 %v623_v39 }
 0x231   : > { %v816_v40 = vpop.eup %815 }
 0x232   : > { %v818_v41 = vpop.eup %817  ;;  %v628_v42 = vadd.f32 1.0, %v816_v40 }
 0x233   : > { %v634_v43 = vadd.f32 1.0, %v818_v41  ;;  %v820_v44 = vpop.eup %819 }
 0x234   : > { %823 = vrcp.f32 %v628_v42  ;;  %v822_v45 = vpop.eup %821  ;;  %v641_v48 = vadd.f32 1.0, %v820_v44 }
 0x235   : > { %825 = vrcp.f32 %v634_v43 }
 0x236   : > { %827 = vrcp.f32 %v641_v48 }
 0x23e   : > { %v824_v47 = vpop.eup %823 }
 0x23f   : > { %v826_v49 = vpop.eup %825  ;;  %v645_v50 = vmul.f32 %v824_v47, %v822_v45 }
 0x240   : > { %v644_v0 = vmul.f32 %v826_v49, %v405_v46  ;;  %v828_v56 = vpop.eup %827 }
 0x242   : > { %v646_v55 = vadd.f32 %v645_v50, %v644_v0 }
 0x244   : > { %829 = vtanh.f32 %v646_v55  ;;  %649 = vst [vmem:[#allocation3] sm:$0xff] %v646_v55 }
 0x24b   :  { %401 = sbr.rel (!%p399_p8) target bundleno = 299 (0x12b), region = 61 }
 0x24e   : > { %v830_v57 = vpop.eup %829 }
 0x24f   : > { %v648_v51 = vmul.f32 %v830_v57, %v828_v56 }
 0x251   : > { %650 = vst [vmem:[#allocation2] sm:$0xff] %v648_v51  ;;  %652 = vst [vmem:[%s651_s27] sm:$0xff] %v648_v51 }
 0x252   :  { %657 = vsyncpa [#allocation6], 1 }

// kernel: lstm_model_forward.4
= control target key start
LH: loop header
LB: loop body
LE: loop exit
PB: predicated region body
PF: predicated region fallthrough
CT: control target
= control target key end

     0   :  { %v821_v3 = vmov 0.0   ;;  %s1347_s1 = inlined_call_operand.vmem [shape: f32[8,128], index: 1, kind: input, shape index: {}]   ;;  %s1348_s2 = inlined_call_operand.vmem [shape: f32[8,128], index: 2, kind: input, shape index: {}]   ;;  %s1349_s3 = inlined_call_operand.vmem [shape: f32[128,512], index: 3, kind: input, shape index: {}]   ;;  %s1350_s4 = inlined_call_operand.vmem [shape: f32[128,512], index: 4, kind: input, shape index: {}]   ;;  %s1351_s6 = inlined_call_operand.vmem [shape: f32[64,128], index: 6, kind: output, shape index: {}]   ;;  %s1352_s0 = inlined_call_operand.vmem [shape: f32[64,128], index: 0, kind: input, shape index: {}]   ;;  %s1353_s5 = inlined_call_operand.vmem [shape: f32[1,512], index: 5, kind: input, shape index: {}]  }
   0x1   :  { %v27_v0 = vld [vmem:[%s1347_s1] sm:$0xff]  ;;  %v40_v2 = vld [vmem:[%s1349_s3 + $0x8] sm:$0xff]  ;;  %189 = vmatprep.mubr.f32.mxu0 %v821_v3  ;;  %302 = vmatprep.mubr.f32.mxu1 %v821_v3  ;;  %v42_v5 = vld [vmem:[%s1349_s3 + $0x18] sm:$0xff] }
   0x2   :  { %v29_v1 = vld [vmem:[%s1348_s2] sm:$0xff]  ;;  %28 = vst [vmem:[#allocation2] sm:$0xff] %v27_v0  ;;  %v44_v4 = vld [vmem:[%s1349_s3 + $0x28] sm:$0xff]  ;;  %v46_v6 = vld [vmem:[%s1349_s3 + $0x38] sm:$0xff] }
   0x3   :  { %30 = vst [vmem:[#allocation3] sm:$0xff] %v29_v1  ;;  %v659_v7 = vpack.c.bf16 %v44_v4, %v40_v2  ;;  %v691_v8 = vpack.c.bf16 %v46_v6, %v42_v5  ;;  %v39_v9 = vld [vmem:[%s1349_s3] sm:$0xff]  ;;  %v41_v11 = vld [vmem:[%s1349_s3 + $0x10] sm:$0xff]  ;;  %v48_v14 = vld [vmem:[%s1349_s3 + $0x48] sm:$0xff] }
   0x4   :  { %v43_v10 = vld [vmem:[%s1349_s3 + $0x20] sm:$0xff]  ;;  %v45_v13 = vld [vmem:[%s1349_s3 + $0x30] sm:$0xff]  ;;  %v52_v15 = vld [vmem:[%s1349_s3 + $0x68] sm:$0xff] }
   0x5   :  { %v661_v12 = vpack.c.bf16 %v43_v10, %v39_v9  ;;  %660 = vmatprep.subr.bf16.mxu0 %v659_v7  ;;  %692 = vmatprep.subr.bf16.mxu1 %v691_v8  ;;  %v693_v16 = vpack.c.bf16 %v45_v13, %v41_v11  ;;  %v663_v17 = vpack.c.bf16 %v52_v15, %v48_v14  ;;  %v50_v18 = vld [vmem:[%s1349_s3 + $0x58] sm:$0xff]  ;;  %v47_v20 = vld [vmem:[%s1349_s3 + $0x40] sm:$0xff]  ;;  %v49_v23 = vld [vmem:[%s1349_s3 + $0x50] sm:$0xff] }
   0x6   :  { %v54_v19 = vld [vmem:[%s1349_s3 + $0x78] sm:$0xff]  ;;  %v51_v22 = vld [vmem:[%s1349_s3 + $0x60] sm:$0xff]  ;;  %v53_v24 = vld [vmem:[%s1349_s3 + $0x70] sm:$0xff] }
   0x7   :  { %662 = vmatpush1.bf16.msra.mxu0 %v661_v12  ;;  %v695_v21 = vpack.c.bf16 %v54_v19, %v50_v18  ;;  %694 = vmatpush1.bf16.msra.mxu1 %v693_v16  ;;  %v665_v25 = vpack.c.bf16 %v51_v22, %v47_v20  ;;  %v697_v26 = vpack.c.bf16 %v53_v24, %v49_v23  ;;  %v56_v27 = vld [vmem:[%s1349_s3 + $0x88] sm:$0xff]  ;;  %v58_v29 = vld [vmem:[%s1349_s3 + $0x98] sm:$0xff]  ;;  %v55_v32 = vld [vmem:[%s1349_s3 + $0x80] sm:$0xff] }
   0x8   :  { %664 = vmatprep.subr.bf16.mxu0 %v663_v17  ;;  %v60_v28 = vld [vmem:[%s1349_s3 + $0xa8] sm:$0xff]  ;;  %v62_v31 = vld [vmem:[%s1349_s3 + $0xb8] sm:$0xff]  ;;  %v59_v33 = vld [vmem:[%s1349_s3 + $0xa0] sm:$0xff] }
   0x9   :  { %696 = vmatprep.subr.bf16.mxu1 %v695_v21  ;;  %v667_v30 = vpack.c.bf16 %v60_v28, %v56_v27  ;;  %v699_v34 = vpack.c.bf16 %v62_v31, %v58_v29  ;;  %v57_v35 = vld [vmem:[%s1349_s3 + $0x90] sm:$0xff]  ;;  %v64_v37 = vld [vmem:[%s1349_s3 + $0xc8] sm:$0xff]  ;;  %v669_v38 = vpack.c.bf16 %v59_v33, %v55_v32  ;;  %v66_v40 = vld [vmem:[%s1349_s3 + $0xd8] sm:$0xff] }
   0xa   :  { %v61_v36 = vld [vmem:[%s1349_s3 + $0xb0] sm:$0xff]  ;;  %v68_v39 = vld [vmem:[%s1349_s3 + $0xe8] sm:$0xff]  ;;  %v70_v41 = vld [vmem:[%s1349_s3 + $0xf8] sm:$0xff] }
   0xb   :  { %666 = vmatpush1.bf16.msra.mxu0 %v665_v25  ;;  %698 = vmatpush1.bf16.msra.mxu1 %v697_v26  ;;  %v701_v42 = vpack.c.bf16 %v61_v36, %v57_v35  ;;  %v671_v43 = vpack.c.bf16 %v68_v39, %v64_v37  ;;  %v63_v44 = vld [vmem:[%s1349_s3 + $0xc0] sm:$0xff]  ;;  %v65_v46 = vld [vmem:[%s1349_s3 + $0xd0] sm:$0xff]  ;;  %v703_v47 = vpack.c.bf16 %v70_v41, %v66_v40  ;;  %v72_v49 = vld [vmem:[%s1349_s3 + $0x108] sm:$0xff] }
   0xc   :  { %668 = vmatprep.subr.bf16.mxu0 %v667_v30  ;;  %v67_v45 = vld [vmem:[%s1349_s3 + $0xe0] sm:$0xff]  ;;  %700 = vmatprep.subr.bf16.mxu1 %v699_v34  ;;  %v69_v48 = vld [vmem:[%s1349_s3 + $0xf0] sm:$0xff]  ;;  %v76_v50 = vld [vmem:[%s1349_s3 + $0x128] sm:$0xff] }
   0xd   :  { %v74_v51 = vld [vmem:[%s1349_s3 + $0x118] sm:$0xff]  ;;  %v673_v53 = vpack.c.bf16 %v67_v45, %v63_v44  ;;  %v705_v54 = vpack.c.bf16 %v69_v48, %v65_v46  ;;  %v675_v55 = vpack.c.bf16 %v76_v50, %v72_v49  ;;  %v71_v56 = vld [vmem:[%s1349_s3 + $0x100] sm:$0xff]  ;;  %v73_v58 = vld [vmem:[%s1349_s3 + $0x110] sm:$0xff]  ;;  %v105_v44 = vlaneseq }
   0xe   :  { %v78_v52 = vld [vmem:[%s1349_s3 + $0x138] sm:$0xff]  ;;  %v75_v57 = vld [vmem:[%s1349_s3 + $0x120] sm:$0xff]  ;;  %v77_v60 = vld [vmem:[%s1349_s3 + $0x130] sm:$0xff] }
   0xf   :  { %670 = vmatpush1.bf16.msra.mxu0 %v669_v38  ;;  %702 = vmatpush1.bf16.msra.mxu1 %v701_v42  ;;  %v707_v59 = vpack.c.bf16 %v78_v52, %v74_v51  ;;  %v80_v61 = vld [vmem:[%s1349_s3 + $0x148] sm:$0xff]  ;;  %v82_v63 = vld [vmem:[%s1349_s3 + $0x158] sm:$0xff]  ;;  %v677_v1 = vpack.c.bf16 %v75_v57, %v71_v56  ;;  %v709_v2 = vpack.c.bf16 %v77_v60, %v73_v58  ;;  %v79_v5 = vld [vmem:[%s1349_s3 + $0x140] sm:$0xff]  ;;  %v106_v45 = vshrl.u32 %v105_v44, 7 }
  0x10   :  { %672 = vmatprep.subr.bf16.mxu0 %v671_v43  ;;  %704 = vmatprep.subr.bf16.mxu1 %v703_v47  ;;  %v84_v62 = vld [vmem:[%s1349_s3 + $0x168] sm:$0xff]  ;;  %v86_v0 = vld [vmem:[%s1349_s3 + $0x178] sm:$0xff]  ;;  %v83_v6 = vld [vmem:[%s1349_s3 + $0x160] sm:$0xff] }
  0x11   :  { %v679_v4 = vpack.c.bf16 %v84_v62, %v80_v61  ;;  %v81_v7 = vld [vmem:[%s1349_s3 + $0x150] sm:$0xff]  ;;  %v711_v8 = vpack.c.bf16 %v86_v0, %v82_v63  ;;  %v88_v10 = vld [vmem:[%s1349_s3 + $0x188] sm:$0xff]  ;;  %v90_v12 = vld [vmem:[%s1349_s3 + $0x198] sm:$0xff]  ;;  %v681_v14 = vpack.c.bf16 %v83_v6, %v79_v5  ;;  %v107_v46 = vsub.s32 0, %v106_v45 }
  0x12   :  { %v85_v9 = vld [vmem:[%s1349_s3 + $0x170] sm:$0xff]  ;;  %v92_v11 = vld [vmem:[%s1349_s3 + $0x1a8] sm:$0xff]  ;;  %v94_v13 = vld [vmem:[%s1349_s3 + $0x1b8] sm:$0xff]  ;;  %v115_v48 = vsub.s32 2, %v106_v45  ;;  %v111_v49 = vsub.s32 1, %v106_v45  ;;  %v119_v50 = vsub.s32 3, %v106_v45 }
  0x13   :  { %674 = vmatpush1.bf16.msra.mxu0 %v673_v53  ;;  %706 = vmatpush1.bf16.msra.mxu1 %v705_v54  ;;  %v713_v15 = vpack.c.bf16 %v85_v9, %v81_v7  ;;  %v683_v16 = vpack.c.bf16 %v92_v11, %v88_v10  ;;  %v87_v17 = vld [vmem:[%s1349_s3 + $0x180] sm:$0xff]  ;;  %v89_v19 = vld [vmem:[%s1349_s3 + $0x190] sm:$0xff]  ;;  %v715_v20 = vpack.c.bf16 %v94_v13, %v90_v12  ;;  %v96_v22 = vld [vmem:[%s1349_s3 + $0x1c8] sm:$0xff] }
  0x14   :  { %676 = vmatprep.subr.bf16.mxu0 %v675_v55  ;;  %708 = vmatprep.subr.bf16.mxu1 %v707_v59  ;;  %v91_v18 = vld [vmem:[%s1349_s3 + $0x1a0] sm:$0xff]  ;;  %v93_v21 = vld [vmem:[%s1349_s3 + $0x1b0] sm:$0xff]  ;;  %v100_v23 = vld [vmem:[%s1349_s3 + $0x1e8] sm:$0xff] }
  0x15   :  { %v98_v24 = vld [vmem:[%s1349_s3 + $0x1d8] sm:$0xff]  ;;  %v685_v26 = vpack.c.bf16 %v91_v18, %v87_v17  ;;  %v717_v27 = vpack.c.bf16 %v93_v21, %v89_v19  ;;  %v687_v28 = vpack.c.bf16 %v100_v23, %v96_v22  ;;  %v95_v29 = vld [vmem:[%s1349_s3 + $0x1c0] sm:$0xff]  ;;  %v97_v32 = vld [vmem:[%s1349_s3 + $0x1d0] sm:$0xff] }
  0x16   :  { %v102_v25 = vld [vmem:[%s1349_s3 + $0x1f8] sm:$0xff]  ;;  %v99_v30 = vld [vmem:[%s1349_s3 + $0x1e0] sm:$0xff]  ;;  %v101_v33 = vld [vmem:[%s1349_s3 + $0x1f0] sm:$0xff] }
  0x17   :  { %678 = vmatpush1.bf16.msra.mxu0 %v677_v1  ;;  %710 = vmatpush1.bf16.msra.mxu1 %v709_v2  ;;  %v719_v31 = vpack.c.bf16 %v102_v25, %v98_v24  ;;  %v689_v34 = vpack.c.bf16 %v99_v30, %v95_v29  ;;  %v721_v35 = vpack.c.bf16 %v101_v33, %v97_v32  ;;  %v31_v36 = vld [vmem:[%s1352_s0] sm:$0xff]  ;;  %v32_v37 = vld [vmem:[%s1352_s0 + $0x8] sm:$0xff]  ;;  %v33_v38 = vld [vmem:[%s1352_s0 + $0x10] sm:$0xff] }
  0x18   :  { %680 = vmatprep.subr.bf16.mxu0 %v679_v4  ;;  %712 = vmatprep.subr.bf16.mxu1 %v711_v8  ;;  %v34_v39 = vld [vmem:[%s1352_s0 + $0x18] sm:$0xff]  ;;  %v35_v40 = vld [vmem:[%s1352_s0 + $0x20] sm:$0xff]  ;;  %v36_v41 = vld [vmem:[%s1352_s0 + $0x28] sm:$0xff] }
  0x19   :  { %v37_v42 = vld [vmem:[%s1352_s0 + $0x30] sm:$0xff]  ;;  %v38_v43 = vld [vmem:[%s1352_s0 + $0x38] sm:$0xff]  ;;  %v103_v47 = vld [vmem:[%s1353_s5] sm:$0xf]  ;;  %s1139_s0 = smov 0  }
  0x1a   :  { %v1099_v51 = vrot.slane %v103_v47, %v107_v46  ;;  %v1101_v52 = vrot.slane %v103_v47, %v115_v48  ;;  %v1103_v53 = vrot.slane %v103_v47, %v111_v49  ;;  %v1105_v54 = vrot.slane %v103_v47, %v119_v50 }
  0x1b   :  { %682 = vmatpush1.bf16.msra.mxu0 %v681_v14  ;;  %714 = vmatpush1.bf16.msra.mxu1 %v713_v15 }
  0x1c   :  { %684 = vmatprep.subr.bf16.mxu0 %v683_v16  ;;  %716 = vmatprep.subr.bf16.mxu1 %v715_v20 }
  0x1f   :  { %686 = vmatpush1.bf16.msra.mxu0 %v685_v26  ;;  %718 = vmatpush1.bf16.msra.mxu1 %v717_v27 }
  0x20   :  { %688 = vmatprep.subr.bf16.mxu0 %v687_v28  ;;  %720 = vmatprep.subr.bf16.mxu1 %v719_v31 }
  0x23   :  { %690 = vmatpush1.bf16.msra.mxu0 %v689_v34  ;;  %722 = vmatpush1.bf16.msra.mxu1 %v721_v35 }
  0x26   :  { %190 = vmatmul.mubr.f32.vlgmr.msra.gmra.mrb[0].mxu0 %v31_v36  ;;  %303 = vmatmul.mubr.f32.vlgmr.msra.gmra.mrb[0].mxu1 %v31_v36 }
  0x27   :  { %195 = vmatprep.mubr.f32.mxu0 %v821_v3  ;;  %308 = vmatprep.mubr.f32.mxu1 %v821_v3 }
  0x2a   :  { %196 = vmatmul.mubr.f32.gmra.mrb[2].mxu0 %v32_v37  ;;  %309 = vmatmul.mubr.f32.gmra.mrb[2].mxu1 %v32_v37 }
  0x2b   :  { %201 = vmatprep.mubr.f32.mxu0 %v821_v3  ;;  %314 = vmatprep.mubr.f32.mxu1 %v821_v3 }
  0x2e   :  { %202 = vmatmul.mubr.f32.gmra.mrb[4].mxu0 %v33_v38  ;;  %315 = vmatmul.mubr.f32.gmra.mrb[4].mxu1 %v33_v38 }
  0x2f   :  { %207 = vmatprep.mubr.f32.mxu0 %v821_v3  ;;  %320 = vmatprep.mubr.f32.mxu1 %v821_v3 }
  0x32   :  { %208 = vmatmul.mubr.f32.gmra.mrb[6].mxu0 %v34_v39  ;;  %321 = vmatmul.mubr.f32.gmra.mrb[6].mxu1 %v34_v39 }
  0x33   :  { %213 = vmatprep.mubr.f32.mxu0 %v821_v3  ;;  %326 = vmatprep.mubr.f32.mxu1 %v821_v3 }
  0x36   :  { %214 = vmatmul.mubr.f32.gmra.mrb[8].mxu0 %v35_v40  ;;  %327 = vmatmul.mubr.f32.gmra.mrb[8].mxu1 %v35_v40 }
  0x37   :  { %219 = vmatprep.mubr.f32.mxu0 %v821_v3  ;;  %332 = vmatprep.mubr.f32.mxu1 %v821_v3 }
  0x3a   :  { %220 = vmatmul.mubr.f32.gmra.mrb[10].mxu0 %v36_v41  ;;  %333 = vmatmul.mubr.f32.gmra.mrb[10].mxu1 %v36_v41 }
  0x3b   :  { %225 = vmatprep.mubr.f32.mxu0 %v821_v3  ;;  %338 = vmatprep.mubr.f32.mxu1 %v821_v3 }
  0x3e   :  { %226 = vmatmul.mubr.f32.gmra.mrb[12].mxu0 %v37_v42  ;;  %339 = vmatmul.mubr.f32.gmra.mrb[12].mxu1 %v37_v42 }
  0x3f   :  { %231 = vmatprep.mubr.f32.mxu0 %v821_v3  ;;  %344 = vmatprep.mubr.f32.mxu1 %v821_v3 }
  0x42   :  { %232 = vmatmul.mubr.f32.gmra.mrb[14].mxu0 %v38_v43  ;;  %345 = vmatmul.mubr.f32.gmra.mrb[14].mxu1 %v38_v43 }
  0xf9   :  { %v191_v3 = vpop.f32.mrb[0].mxu0  ;;  %v304_v56 = vpop.f32.mrb[0].mxu1 }
  0xfa   :  { %v192_v55 = vadd.f32 %v191_v3, %v1099_v51  ;;  %v193_v57 = vpop.f32.mrb[1].mxu0  ;;  %v305_v58 = vadd.f32 %v304_v56, %v1101_v52  ;;  %v306_v60 = vpop.f32.mrb[1].mxu1 }
  0xfb   :  { %v194_v59 = vadd.f32 %v193_v57, %v1103_v53  ;;  %v307_v61 = vadd.f32 %v306_v60, %v1105_v54 }
  0xfc   :  { %351 = vst [vmem:[#allocation4] sm:$0xff] %v192_v55  ;;  %353 = vst [vmem:[#allocation4 + $0x10] sm:$0xff] %v305_v58 }
  0xfd   :  { %352 = vst [vmem:[#allocation4 + $0x8] sm:$0xff] %v194_v59  ;;  %v197_v62 = vpop.f32.mrb[2].mxu0  ;;  %354 = vst [vmem:[#allocation4 + $0x18] sm:$0xff] %v307_v61  ;;  %v310_v0 = vpop.f32.mrb[2].mxu1 }
  0xfe   :  { %v198_v63 = vadd.f32 %v197_v62, %v1099_v51  ;;  %v199_v1 = vpop.f32.mrb[3].mxu0  ;;  %v311_v2 = vadd.f32 %v310_v0, %v1101_v52  ;;  %v312_v5 = vpop.f32.mrb[3].mxu1 }
  0xff   :  { %v200_v4 = vadd.f32 %v199_v1, %v1103_v53  ;;  %v313_v6 = vadd.f32 %v312_v5, %v1105_v54 }
 0x100   :  { %355 = vst [vmem:[#allocation4 + $0x20] sm:$0xff] %v198_v63  ;;  %357 = vst [vmem:[#allocation4 + $0x30] sm:$0xff] %v311_v2 }
 0x101   :  { %356 = vst [vmem:[#allocation4 + $0x28] sm:$0xff] %v200_v4  ;;  %v203_v7 = vpop.f32.mrb[4].mxu0  ;;  %358 = vst [vmem:[#allocation4 + $0x38] sm:$0xff] %v313_v6  ;;  %v316_v9 = vpop.f32.mrb[4].mxu1 }
 0x102   :  { %v204_v8 = vadd.f32 %v203_v7, %v1099_v51  ;;  %v205_v10 = vpop.f32.mrb[5].mxu0  ;;  %v317_v11 = vadd.f32 %v316_v9, %v1101_v52  ;;  %v318_v13 = vpop.f32.mrb[5].mxu1 }
 0x103   :  { %v206_v12 = vadd.f32 %v205_v10, %v1103_v53  ;;  %v319_v14 = vadd.f32 %v318_v13, %v1105_v54 }
 0x104   :  { %359 = vst [vmem:[#allocation4 + $0x40] sm:$0xff] %v204_v8  ;;  %361 = vst [vmem:[#allocation4 + $0x50] sm:$0xff] %v317_v11 }
 0x105   :  { %360 = vst [vmem:[#allocation4 + $0x48] sm:$0xff] %v206_v12  ;;  %v209_v15 = vpop.f32.mrb[6].mxu0  ;;  %362 = vst [vmem:[#allocation4 + $0x58] sm:$0xff] %v319_v14  ;;  %v322_v17 = vpop.f32.mrb[6].mxu1 }
 0x106   :  { %v210_v16 = vadd.f32 %v209_v15, %v1099_v51  ;;  %v211_v18 = vpop.f32.mrb[7].mxu0  ;;  %v323_v19 = vadd.f32 %v322_v17, %v1101_v52  ;;  %v324_v21 = vpop.f32.mrb[7].mxu1 }
 0x107   :  { %v212_v20 = vadd.f32 %v211_v18, %v1103_v53  ;;  %v325_v22 = vadd.f32 %v324_v21, %v1105_v54 }
 0x108   :  { %363 = vst [vmem:[#allocation4 + $0x60] sm:$0xff] %v210_v16  ;;  %365 = vst [vmem:[#allocation4 + $0x70] sm:$0xff] %v323_v19 }
 0x109   :  { %364 = vst [vmem:[#allocation4 + $0x68] sm:$0xff] %v212_v20  ;;  %v215_v23 = vpop.f32.mrb[8].mxu0  ;;  %366 = vst [vmem:[#allocation4 + $0x78] sm:$0xff] %v325_v22  ;;  %v328_v25 = vpop.f32.mrb[8].mxu1 }
 0x10a   :  { %v216_v24 = vadd.f32 %v215_v23, %v1099_v51  ;;  %v217_v26 = vpop.f32.mrb[9].mxu0  ;;  %v329_v27 = vadd.f32 %v328_v25, %v1101_v52  ;;  %v330_v29 = vpop.f32.mrb[9].mxu1 }
 0x10b   :  { %v218_v28 = vadd.f32 %v217_v26, %v1103_v53  ;;  %v331_v30 = vadd.f32 %v330_v29, %v1105_v54 }
 0x10c   :  { %367 = vst [vmem:[#allocation4 + $0x80] sm:$0xff] %v216_v24  ;;  %369 = vst [vmem:[#allocation4 + $0x90] sm:$0xff] %v329_v27 }
 0x10d   :  { %368 = vst [vmem:[#allocation4 + $0x88] sm:$0xff] %v218_v28  ;;  %v221_v31 = vpop.f32.mrb[10].mxu0  ;;  %370 = vst [vmem:[#allocation4 + $0x98] sm:$0xff] %v331_v30  ;;  %v334_v33 = vpop.f32.mrb[10].mxu1 }
 0x10e   :  { %v222_v32 = vadd.f32 %v221_v31, %v1099_v51  ;;  %v223_v34 = vpop.f32.mrb[11].mxu0  ;;  %v335_v35 = vadd.f32 %v334_v33, %v1101_v52  ;;  %v336_v37 = vpop.f32.mrb[11].mxu1 }
 0x10f   :  { %v224_v36 = vadd.f32 %v223_v34, %v1103_v53  ;;  %v337_v38 = vadd.f32 %v336_v37, %v1105_v54 }
 0x110   :  { %371 = vst [vmem:[#allocation4 + $0xa0] sm:$0xff] %v222_v32  ;;  %373 = vst [vmem:[#allocation4 + $0xb0] sm:$0xff] %v335_v35 }
 0x111   :  { %372 = vst [vmem:[#allocation4 + $0xa8] sm:$0xff] %v224_v36  ;;  %v227_v39 = vpop.f32.mrb[12].mxu0  ;;  %374 = vst [vmem:[#allocation4 + $0xb8] sm:$0xff] %v337_v38  ;;  %v340_v41 = vpop.f32.mrb[12].mxu1 }
 0x112   :  { %v228_v40 = vadd.f32 %v227_v39, %v1099_v51  ;;  %v229_v42 = vpop.f32.mrb[13].mxu0  ;;  %v341_v43 = vadd.f32 %v340_v41, %v1101_v52  ;;  %v342_v45 = vpop.f32.mrb[13].mxu1 }
 0x113   :  { %v230_v44 = vadd.f32 %v229_v42, %v1103_v53  ;;  %v343_v46 = vadd.f32 %v342_v45, %v1105_v54 }
 0x114   :  { %375 = vst [vmem:[#allocation4 + $0xc0] sm:$0xff] %v228_v40  ;;  %377 = vst [vmem:[#allocation4 + $0xd0] sm:$0xff] %v341_v43 }
 0x115   :  { %376 = vst [vmem:[#allocation4 + $0xc8] sm:$0xff] %v230_v44  ;;  %v233_v47 = vpop.f32.mrb[14].mxu0  ;;  %378 = vst [vmem:[#allocation4 + $0xd8] sm:$0xff] %v343_v46  ;;  %v346_v49 = vpop.f32.mrb[14].mxu1 }
 0x116   :  { %v234_v48 = vadd.f32 %v233_v47, %v1099_v51  ;;  %v235_v50 = vpop.f32.mrb[15].mxu0  ;;  %v347_v3 = vadd.f32 %v346_v49, %v1101_v52  ;;  %v348_v56 = vpop.f32.mrb[15].mxu1 }
 0x117   :  { %v236_v55 = vadd.f32 %v235_v50, %v1103_v53  ;;  %v349_v57 = vadd.f32 %v348_v56, %v1105_v54 }
 0x118   :  { %379 = vst [vmem:[#allocation4 + $0xe0] sm:$0xff] %v234_v48  ;;  %381 = vst [vmem:[#allocation4 + $0xf0] sm:$0xff] %v347_v3 }
 0x119   :  { %380 = vst [vmem:[#allocation4 + $0xe8] sm:$0xff] %v236_v55  ;;  %382 = vst [vmem:[#allocation4 + $0xf8] sm:$0xff] %v349_v57 }
 0x11a LB: > { %v402_v51 = vld [vmem:[%s1350_s4 + $0x8] sm:$0xff]  ;;  %v401_v53 = vld [vmem:[%s1350_s4] sm:$0xff]  ;;  %v822_v61 = vmov 0.0   ;;  %v404_v10 = vld [vmem:[%s1350_s4 + $0x18] sm:$0xff]  ;;  %s652_s28 = sshll.u32 %s819_s0, 3  ;;  %s388_s0 = sadd.s32 1, %s819_s0   ;;  %s819_s0 = sphi %s1139_s0, %s388_s0  }
 0x11b   : > { %v406_v52 = vld [vmem:[%s1350_s4 + $0x28] sm:$0xff]  ;;  %v405_v58 = vld [vmem:[%s1350_s4 + $0x20] sm:$0xff]  ;;  %529 = vmatprep.mubr.f32.mxu0 %v822_v61  ;;  %600 = vmatprep.mubr.f32.mxu1 %v822_v61  ;;  %v408_v11 = vld [vmem:[%s1350_s4 + $0x38] sm:$0xff]  ;;  %s392_s1 = sshra.s32 %s652_s28, 3  ;;  %s637_s8 = scalar_lea.vmem %s1351_s6, %s652_s28 }
 0x11c   : > { %v723_v54 = vpack.c.bf16 %v406_v52, %v402_v51  ;;  %v410_v59 = vld [vmem:[%s1350_s4 + $0x48] sm:$0xff]  ;;  %v725_v62 = vpack.c.bf16 %v405_v58, %v401_v53  ;;  %v409_v0 = vld [vmem:[%s1350_s4 + $0x40] sm:$0xff]  ;;  %v755_v13 = vpack.c.bf16 %v408_v11, %v404_v10  ;;  %v403_v14 = vld [vmem:[%s1350_s4 + $0x10] sm:$0xff]  ;;  %s658_s29 = sshll.u32 %s392_s1, 5  ;;  %p385_p0 = scmp.ge.s32.totalorder %s388_s0, 8  }
 0x11d   : > { %v414_v60 = vld [vmem:[%s1350_s4 + $0x68] sm:$0xff]  ;;  %v413_v1 = vld [vmem:[%s1350_s4 + $0x60] sm:$0xff]  ;;  %v407_v15 = vld [vmem:[%s1350_s4 + $0x30] sm:$0xff]  ;;  %s396_s2 = scalar_lea.vmem [#allocation4], %s658_s29 }
 0x11e   : > { %v727_v63 = vpack.c.bf16 %v414_v60, %v410_v59  ;;  %v418_v2 = vld [vmem:[%s1350_s4 + $0x88] sm:$0xff]  ;;  %724 = vmatprep.subr.bf16.mxu0 %v723_v54  ;;  %v729_v5 = vpack.c.bf16 %v413_v1, %v409_v0  ;;  %v417_v6 = vld [vmem:[%s1350_s4 + $0x80] sm:$0xff]  ;;  %v757_v16 = vpack.c.bf16 %v407_v15, %v403_v14  ;;  %756 = vmatprep.subr.bf16.mxu1 %v755_v13  ;;  %v412_v18 = vld [vmem:[%s1350_s4 + $0x58] sm:$0xff] }
 0x11f   : > { %v422_v4 = vld [vmem:[%s1350_s4 + $0xa8] sm:$0xff]  ;;  %726 = vmatpush1.bf16.msra.mxu0 %v725_v62  ;;  %v421_v7 = vld [vmem:[%s1350_s4 + $0xa0] sm:$0xff]  ;;  %v416_v19 = vld [vmem:[%s1350_s4 + $0x78] sm:$0xff] }
 0x120   : > { %728 = vmatprep.subr.bf16.mxu0 %v727_v63  ;;  %v731_v8 = vpack.c.bf16 %v422_v4, %v418_v2  ;;  %v426_v9 = vld [vmem:[%s1350_s4 + $0xc8] sm:$0xff]  ;;  %v733_v17 = vpack.c.bf16 %v421_v7, %v417_v6  ;;  %v411_v20 = vld [vmem:[%s1350_s4 + $0x50] sm:$0xff]  ;;  %v425_v22 = vld [vmem:[%s1350_s4 + $0xc0] sm:$0xff]  ;;  %758 = vmatpush1.bf16.msra.mxu1 %v757_v16  ;;  %v759_v24 = vpack.c.bf16 %v416_v19, %v412_v18 }
 0x121   : > { %v430_v12 = vld [vmem:[%s1350_s4 + $0xe8] sm:$0xff]  ;;  %v429_v23 = vld [vmem:[%s1350_s4 + $0xe0] sm:$0xff]  ;;  %v415_v25 = vld [vmem:[%s1350_s4 + $0x70] sm:$0xff] }
 0x122   : > { %v735_v21 = vpack.c.bf16 %v430_v12, %v426_v9  ;;  %v434_v26 = vld [vmem:[%s1350_s4 + $0x108] sm:$0xff]  ;;  %v761_v28 = vpack.c.bf16 %v415_v25, %v411_v20  ;;  %v420_v29 = vld [vmem:[%s1350_s4 + $0x98] sm:$0xff]  ;;  %760 = vmatprep.subr.bf16.mxu1 %v759_v24  ;;  %v419_v31 = vld [vmem:[%s1350_s4 + $0x90] sm:$0xff]  ;;  %v737_v33 = vpack.c.bf16 %v429_v23, %v425_v22 }
 0x123   : > { %730 = vmatpush1.bf16.msra.mxu0 %v729_v5  ;;  %v438_v27 = vld [vmem:[%s1350_s4 + $0x128] sm:$0xff]  ;;  %v424_v30 = vld [vmem:[%s1350_s4 + $0xb8] sm:$0xff]  ;;  %v423_v32 = vld [vmem:[%s1350_s4 + $0xb0] sm:$0xff] }
 0x124   : > { %732 = vmatprep.subr.bf16.mxu0 %v731_v8  ;;  %v433_v34 = vld [vmem:[%s1350_s4 + $0x100] sm:$0xff]  ;;  %v763_v36 = vpack.c.bf16 %v424_v30, %v420_v29  ;;  %v739_v37 = vpack.c.bf16 %v438_v27, %v434_v26  ;;  %762 = vmatpush1.bf16.msra.mxu1 %v761_v28  ;;  %v442_v38 = vld [vmem:[%s1350_s4 + $0x148] sm:$0xff]  ;;  %v765_v39 = vpack.c.bf16 %v423_v32, %v419_v31  ;;  %v428_v40 = vld [vmem:[%s1350_s4 + $0xd8] sm:$0xff] }
 0x125   : > { %v437_v35 = vld [vmem:[%s1350_s4 + $0x120] sm:$0xff]  ;;  %v432_v41 = vld [vmem:[%s1350_s4 + $0xf8] sm:$0xff]  ;;  %v446_v42 = vld [vmem:[%s1350_s4 + $0x168] sm:$0xff] }
 0x126   : > { %764 = vmatprep.subr.bf16.mxu1 %v763_v36  ;;  %v767_v43 = vpack.c.bf16 %v432_v41, %v428_v40  ;;  %v427_v44 = vld [vmem:[%s1350_s4 + $0xd0] sm:$0xff]  ;;  %v741_v46 = vpack.c.bf16 %v437_v35, %v433_v34  ;;  %v436_v47 = vld [vmem:[%s1350_s4 + $0x118] sm:$0xff]  ;;  %v743_v49 = vpack.c.bf16 %v446_v42, %v442_v38  ;;  %v441_v50 = vld [vmem:[%s1350_s4 + $0x140] sm:$0xff] }
 0x127   : > { %734 = vmatpush1.bf16.msra.mxu0 %v733_v17  ;;  %v431_v45 = vld [vmem:[%s1350_s4 + $0xf0] sm:$0xff]  ;;  %v440_v48 = vld [vmem:[%s1350_s4 + $0x138] sm:$0xff]  ;;  %v445_v3 = vld [vmem:[%s1350_s4 + $0x160] sm:$0xff] }
 0x128   : > { %736 = vmatprep.subr.bf16.mxu0 %v735_v21  ;;  %766 = vmatpush1.bf16.msra.mxu1 %v765_v39  ;;  %v450_v55 = vld [vmem:[%s1350_s4 + $0x188] sm:$0xff]  ;;  %v769_v56 = vpack.c.bf16 %v431_v45, %v427_v44  ;;  %v771_v51 = vpack.c.bf16 %v440_v48, %v436_v47  ;;  %v435_v52 = vld [vmem:[%s1350_s4 + $0x110] sm:$0xff]  ;;  %v444_v54 = vld [vmem:[%s1350_s4 + $0x158] sm:$0xff]  ;;  %v745_v59 = vpack.c.bf16 %v445_v3, %v441_v50 }
 0x129   : > { %v454_v57 = vld [vmem:[%s1350_s4 + $0x1a8] sm:$0xff]  ;;  %768 = vmatprep.subr.bf16.mxu1 %v767_v43  ;;  %v439_v53 = vld [vmem:[%s1350_s4 + $0x130] sm:$0xff]  ;;  %v448_v58 = vld [vmem:[%s1350_s4 + $0x178] sm:$0xff] }
 0x12a   : > { %v747_v60 = vpack.c.bf16 %v454_v57, %v450_v55  ;;  %v449_v61 = vld [vmem:[%s1350_s4 + $0x180] sm:$0xff]  ;;  %v458_v63 = vld [vmem:[%s1350_s4 + $0x1c8] sm:$0xff]  ;;  %v773_v0 = vpack.c.bf16 %v439_v53, %v435_v52  ;;  %v775_v2 = vpack.c.bf16 %v448_v58, %v444_v54  ;;  %v443_v4 = vld [vmem:[%s1350_s4 + $0x150] sm:$0xff] }
 0x12b   : > { %738 = vmatpush1.bf16.msra.mxu0 %v737_v33  ;;  %v453_v62 = vld [vmem:[%s1350_s4 + $0x1a0] sm:$0xff]  ;;  %v462_v1 = vld [vmem:[%s1350_s4 + $0x1e8] sm:$0xff]  ;;  %v447_v5 = vld [vmem:[%s1350_s4 + $0x170] sm:$0xff] }
 0x12c   : > { %740 = vmatprep.subr.bf16.mxu0 %v739_v37  ;;  %770 = vmatpush1.bf16.msra.mxu1 %v769_v56  ;;  %v452_v6 = vld [vmem:[%s1350_s4 + $0x198] sm:$0xff]  ;;  %v749_v8 = vpack.c.bf16 %v453_v62, %v449_v61  ;;  %v751_v9 = vpack.c.bf16 %v462_v1, %v458_v63  ;;  %v457_v10 = vld [vmem:[%s1350_s4 + $0x1c0] sm:$0xff]  ;;  %v777_v12 = vpack.c.bf16 %v447_v5, %v443_v4  ;;  %v451_v14 = vld [vmem:[%s1350_s4 + $0x190] sm:$0xff] }
 0x12d   : > { %772 = vmatprep.subr.bf16.mxu1 %v771_v51  ;;  %v456_v7 = vld [vmem:[%s1350_s4 + $0x1b8] sm:$0xff]  ;;  %v461_v11 = vld [vmem:[%s1350_s4 + $0x1e0] sm:$0xff]  ;;  %v455_v15 = vld [vmem:[%s1350_s4 + $0x1b0] sm:$0xff] }
 0x12e   : > { %v779_v13 = vpack.c.bf16 %v456_v7, %v452_v6  ;;  %v460_v16 = vld [vmem:[%s1350_s4 + $0x1d8] sm:$0xff]  ;;  %v753_v18 = vpack.c.bf16 %v461_v11, %v457_v10  ;;  %v781_v19 = vpack.c.bf16 %v455_v15, %v451_v14  ;;  %v459_v21 = vld [vmem:[%s1350_s4 + $0x1d0] sm:$0xff]  ;;  %v390_v23 = vld [vmem:[#allocation2] sm:$0xff] }
 0x12f   : > { %742 = vmatpush1.bf16.msra.mxu0 %v741_v46  ;;  %v464_v17 = vld [vmem:[%s1350_s4 + $0x1f8] sm:$0xff]  ;;  %v463_v22 = vld [vmem:[%s1350_s4 + $0x1f0] sm:$0xff]  ;;  %v397_v25 = vld [vmem:[%s396_s2] sm:$0xff] }
 0x130   : > { %744 = vmatprep.subr.bf16.mxu0 %v743_v49  ;;  %774 = vmatpush1.bf16.msra.mxu1 %v773_v0  ;;  %v783_v20 = vpack.c.bf16 %v464_v17, %v460_v16  ;;  %v785_v24 = vpack.c.bf16 %v463_v22, %v459_v21  ;;  %v398_v26 = vld [vmem:[%s396_s2 + $0x8] sm:$0xff]  ;;  %v400_v33 = vld [vmem:[%s396_s2 + $0x18] sm:$0xff]  ;;  %v399_v37 = vld [vmem:[%s396_s2 + $0x10] sm:$0xff] }
 0x131   : > { %776 = vmatprep.subr.bf16.mxu1 %v775_v2  ;;  %v391_v46 = vld [vmem:[#allocation3] sm:$0xff] }
 0x133   : > { %746 = vmatpush1.bf16.msra.mxu0 %v745_v59 }
 0x134   : > { %748 = vmatprep.subr.bf16.mxu0 %v747_v60  ;;  %778 = vmatpush1.bf16.msra.mxu1 %v777_v12 }
 0x135   : > { %780 = vmatprep.subr.bf16.mxu1 %v779_v13 }
 0x137   : > { %750 = vmatpush1.bf16.msra.mxu0 %v749_v8 }
 0x138   : > { %752 = vmatprep.subr.bf16.mxu0 %v751_v9  ;;  %782 = vmatpush1.bf16.msra.mxu1 %v781_v19 }
 0x139   : > { %784 = vmatprep.subr.bf16.mxu1 %v783_v20 }
 0x13b   : > { %754 = vmatpush1.bf16.msra.mxu0 %v753_v18 }
 0x13c   : > { %786 = vmatpush1.bf16.msra.mxu1 %v785_v24 }
 0x13e   : > { %530 = vmatmul.mubr.f32.vlgmr.msra.gmra.mrb[0].mxu0 %v390_v23 }
 0x13f   : > { %601 = vmatmul.mubr.f32.vlgmr.msra.gmra.mrb[0].mxu1 %v390_v23 }
 0x211   : > { %v531_v27 = vpop.f32.mrb[0].mxu0 }
 0x212   : > { %v607_v28 = vadd.f32 %v531_v27, %v397_v25  ;;  %v533_v29 = vpop.f32.mrb[1].mxu0  ;;  %v602_v34 = vpop.f32.mrb[0].mxu1 }
 0x213   : > { %v608_v30 = vadd.f32 %v533_v29, %v398_v26  ;;  %v604_v35 = vpop.f32.mrb[1].mxu1  ;;  %v609_v39 = vadd.f32 %v602_v34, %v399_v37 }
 0x214   : > { %v655_v31 = vmul.f32 -1.442695, %v607_v28  ;;  %v610_v36 = vadd.f32 %v604_v35, %v400_v33 }
 0x215   : > { %v656_v32 = vmul.f32 -1.442695, %v608_v30 }
 0x216   : > { %797 = vpow2.f32 %v655_v31  ;;  %v657_v38 = vmul.f32 -1.442695, %v610_v36 }
 0x217   : > { %799 = vpow2.f32 %v656_v32 }
 0x218   : > { %801 = vpow2.f32 %v657_v38 }
 0x219   : > { %803 = vtanh.f32 %v609_v39 }
 0x220   : > { %v798_v40 = vpop.eup %797 }
 0x221   : > { %v800_v41 = vpop.eup %799  ;;  %v614_v42 = vadd.f32 1.0, %v798_v40 }
 0x222   : > { %v620_v43 = vadd.f32 1.0, %v800_v41  ;;  %v802_v44 = vpop.eup %801 }
 0x223   : > { %805 = vrcp.f32 %v614_v42  ;;  %v804_v45 = vpop.eup %803  ;;  %v627_v48 = vadd.f32 1.0, %v802_v44 }
 0x224   : > { %807 = vrcp.f32 %v620_v43 }
 0x225   : > { %809 = vrcp.f32 %v627_v48 }
 0x22d   : > { %v806_v47 = vpop.eup %805 }
 0x22e   : > { %v808_v49 = vpop.eup %807  ;;  %v631_v50 = vmul.f32 %v806_v47, %v804_v45 }
 0x22f   : > { %v630_v3 = vmul.f32 %v808_v49, %v391_v46  ;;  %v810_v56 = vpop.eup %809 }
 0x231   : > { %v632_v55 = vadd.f32 %v631_v50, %v630_v3 }
 0x233   : > { %811 = vtanh.f32 %v632_v55  ;;  %635 = vst [vmem:[#allocation3] sm:$0xff] %v632_v55 }
 0x23a   :  { %387 = sbr.rel (!%p385_p0) target bundleno = 282 (0x11a), region = 57 }
 0x23d   : > { %v812_v57 = vpop.eup %811 }
 0x23e   : > { %v634_v51 = vmul.f32 %v812_v57, %v810_v56 }
 0x240   : > { %636 = vst [vmem:[#allocation2] sm:$0xff] %v634_v51  ;;  %638 = vst [vmem:[%s637_s8] sm:$0xff] %v634_v51 }

</bundles_post_ra>
